<compile_context>
chip_gen: v6e
topology: v6e:2x2x1
jax: 0.10.0
libtpu: 0.0.40
codegen_flags: <defaults>
</compile_context>

<pallas_src>
import jax
import jax.numpy as jnp
from jax.experimental import pallas as pl
from jax.experimental.pallas import tpu as pltpu

# Hyperparameters `h` from the module's closure — small & deterministic.
N_OF_ANCHORS = 2
N_OF_ATTRIBUTES_PER_BOX = 2
C = N_OF_ANCHORS * N_OF_ATTRIBUTES_PER_BOX  # channel dim of the NCHW input


def _reshape_transpose_kernel(x_ref, o_ref):
    """x_ref: (B*C, XY_t) lane-dense input tile; o_ref: (B, XY_t*C) lane-dense output tile."""
    b = o_ref.shape[0]
    bc, xy_t = x_ref.shape
    c = bc // b
    x = x_ref[...].reshape(b, c, xy_t)          # split batch/channel (vreg relayout)
    y = jnp.transpose(x, (0, 2, 1))             # (B, XY_t, C) — XLU transpose
    o_ref[...] = y.reshape(b, xy_t * c)         # flatten -> lane-dense unmasked stores


def _choose_xy_tile(xy: int, max_tile: int = 2048) -> int:
    """Largest 128-multiple divisor of XY that is <= max_tile (full XY if small)."""
    if xy <= max_tile:
        return xy
    t = (max_tile // 128) * 128
    while t >= 128:
        if xy % t == 0:
            return t
        t -= 128
    return xy  # no aligned divisor found: fall back to a single full-XY block


def output_forward(x: jax.Array) -> jax.Array:
    """Equivalent of Output.forward for an NCHW input `x`."""
    b, c, xdim, ydim = x.shape
    assert c == N_OF_ANCHORS * N_OF_ATTRIBUTES_PER_BOX
    xy = xdim * ydim

    # Free contiguous view: lane-dense 2D slab with XY on the lane axis.
    x2d = x.reshape(b * c, xy)

    xy_t = _choose_xy_tile(xy)
    num_tiles = xy // xy_t  # _choose_xy_tile guarantees divisibility

    out_flat = pl.pallas_call(
        _reshape_transpose_kernel,
        out_shape=jax.ShapeDtypeStruct((b, xy * c), x.dtype),
        grid=(num_tiles,),
        in_specs=[pl.BlockSpec((b * c, xy_t), lambda j: (0, j))],
        out_specs=pl.BlockSpec((b, xy_t * c), lambda j: (0, j)),
        compiler_params=pltpu.CompilerParams(
            dimension_semantics=("parallel",)  # shards XY tiles across v7x's 2 TCs
        ),
    )(x2d)

    # Free contiguous view: (B, XY*C) -> (B, XY*A, attr). If the consumer is
    # another TPU kernel, prefer consuming `out_flat` directly (last dim of 2 is
    # lane-sparse for downstream loads).
    return out_flat.reshape(b, xy * N_OF_ANCHORS, N_OF_ATTRIBUTES_PER_BOX)


def _reference_forward(x: jax.Array) -> jax.Array:
    """Pure-JAX replica of the PyTorch forward for verification."""
    b, c, xdim, ydim = x.shape
    xy = xdim * ydim
    r = x.reshape(b, c, xy)
    r = jnp.transpose(r, (0, 2, 1))
    return r.reshape(b, xy * N_OF_ANCHORS, N_OF_ATTRIBUTES_PER_BOX)


if __name__ == "__main__":
    key = jax.random.PRNGKey(0)
    # Small shapes consistent with the module: batch=2, C=A*attr=4, spatial 16x16.
    x = jax.random.normal(key, (2, C, 16, 16), dtype=jnp.float32)

    out = jax.block_until_ready(output_forward(x))
    ref = _reference_forward(x)

    assert out.shape == (2, 16 * 16 * N_OF_ANCHORS, N_OF_ATTRIBUTES_PER_BOX), out.shape
    assert jnp.allclose(out, ref), "Pallas output does not match reference"

    print("KERNEL_OK")
</pallas_src>

<mosaic_0001>
module attributes {stable_mosaic.version = 11 : i64} {
  func.func @_reshape_transpose_kernel(%arg0: i32, %arg1: memref<8x256xf32, #tpu.memory_space<vmem>>, %arg2: memref<2x1024xf32, #tpu.memory_space<vmem>>) attributes {dimension_semantics = [#tpu.dimension_semantics<parallel>], iteration_bounds = array<i64: 1>, scalar_prefetch = 0 : i64, scratch_operands = 0 : i64, tpu.core_type = #tpu.core_type<tc>, window_params = [{transform_indices = @transform_0, window_bounds = array<i64: 8, 256>}, {transform_indices = @transform_1, window_bounds = array<i64: 2, 1024>}]} {
    %c0 = arith.constant 0 : index
    %c0_0 = arith.constant 0 : index
    %0 = vector.load %arg1[%c0, %c0_0] : memref<8x256xf32, #tpu.memory_space<vmem>>, vector<8x256xf32>
    %1 = vector.shape_cast %0 : vector<8x256xf32> to vector<2x4x256xf32>
    %2 = tpu.transpose %1, [0, 2, 1] : vector<2x4x256xf32> -> vector<2x256x4xf32>
    %3 = vector.shape_cast %2 : vector<2x256x4xf32> to vector<2x1024xf32>
    %c0_1 = arith.constant 0 : index
    %c0_2 = arith.constant 0 : index
    %4 = vector.load %arg2[%c0_1, %c0_2] : memref<2x1024xf32, #tpu.memory_space<vmem>>, vector<2x1024xf32>
    tpu.vector_store %arg2[%c0_1, %c0_2], %3 {strides = array<i32>} : memref<2x1024xf32, #tpu.memory_space<vmem>>, vector<2x1024xf32>,
    return
  }
  func.func @transform_0(%arg0: i32) -> (i32, i32) {
    %c0_i32 = arith.constant 0 : i32
    %c0_i32_0 = arith.constant 0 : i32
    return %c0_i32, %arg0 : i32, i32
  }
  func.func @transform_1(%arg0: i32) -> (i32, i32) {
    %c0_i32 = arith.constant 0 : i32
    %c0_i32_0 = arith.constant 0 : i32
    return %c0_i32, %arg0 : i32, i32
  }
}

</mosaic_0001>

<bundles_post_ra>
// kernel: tpu_custom_call.1
= control target key start
LH: loop header
LB: loop body
LE: loop exit
PB: predicated region body
PF: predicated region fallthrough
CT: control target
= control target key end

     0   :  { %6 = vsyncpa [#allocation3], 0  ;;  %s5275_s0 = inlined_call_operand.hbm [shape: f32[8,256], index: 0, kind: input, shape index: {}]   ;;  %s5276_s1 = inlined_call_operand.hbm [shape: f32[2,1024], index: 1, kind: output, shape index: {}]  }
   0x1   :  { %7 = vsyncpa [#allocation4], 0  ;;  %s3691_s6 = smov [#allocation2]  }
   0x2   :  { %s14_s7 = sshll.u32 %s3691_s6, 4  ;;  %s15_s7 = int_to_ptr.vmem [resolvable:$true] %s14_s7 }
   0x3   :  { %s3655_s8 = scalar_lea.vmem %s15_s7, 256  ;;  %p3660_p1 = scmp.lt.s32.totalorder %s15_s7, %s15_s7 }
   0x4   :  { %p3656_p0 = scmp.ne.s32.totalorder %s15_s7, %s3655_s8  ;;  %p3661_p2 = scmp.lt.s32.totalorder %s3655_s8, %s3655_s8 }
   0x6   :  { %p3662_p3 = por %p3661_p2, %p3660_p1 }
   0x8   :  { %p3663_p4 = pnand %p3662_p3, %p3656_p0 }
   0xa   :  { %3666 = shalt.err (!%p3663_p4)
}
   0xb   :  { %17 = dma.hbm_to_vmem [thread:$0]  %s5275_s0, 256, %s15_s7, [#allocation3]  }
   0xc   :  { %3687 = dma.done.wait [#allocation3], 256  }
   0xd   :  { %3688 = vsyncadd [#allocation3], 4294967040  ;;  %v21_v0 = vld [vmem:[#allocation2] sm:$0xff]  ;;  %v22_v1 = vld [vmem:[#allocation2 + $0x8] sm:$0xff]  ;;  %v3692_v10 = vmov 1983009808   ;;  %v165_v12 = vlaneseq }
   0xe   :  { %v26_v2 = vcombine.high %v21_v0, %v22_v1  ;;  %v25_v3 = vcombine.low %v21_v0, %v22_v1  ;;  %v3606_v4 = vcombine.high %v22_v1, %v22_v1  ;;  %v3605_v5 = vcombine.low %v22_v1, %v22_v1  ;;  %s3695_s0 = smov 8   ;;  %s3696_s11 = smov 12  }
   0xf   :  { %v163_v11 = vunpack.c.l.s4 %v3692_v10  ;;  %v166_v16 = vshrl.u32 %v165_v12, 7  ;;  %v3693_v20 = vmov 1934713408   ;;  %v3694_v29 = vmov 0.0   ;;  %s3697_s12 = smov 16   ;;  %s3698_s13 = smov 4  }
  0x10   :  { %97 = vxpose.xlu1.b32.start.end [1/1] (short) %v26_v2, 128  ;;  %33 = vxpose.xlu0.b32.start.end [1/1] (short) %v25_v3, 128  ;;  %v194_v21 = vunpack.c.l.s4 %v3693_v20  ;;  %s3699_s14 = smov 20   ;;  %s3700_s15 = smov 24   ;;  %vm3265_vm0 = vcmask 31744   ;;  %vm3267_vm1 = vcmask 64512   ;;  %vm3269_vm2 = vcmask 97280  }
  0x11   :  { %v164_v15 = vunpack.c.0.s8 %v163_v11  ;;  %s3701_s16 = smov 28   ;;  %s3702_s17 = smov 32   ;;  %vm3271_vm3 = vcmask 130048   ;;  %vm3273_vm4 = vcmask 162816   ;;  %vm3275_vm5 = vcmask 195584  }
  0x12   :  { %v195_v26 = vunpack.c.0.s8 %v194_v21  ;;  %s3703_s18 = smov 36   ;;  %s3704_s19 = smov 40   ;;  %vm5330_vm6 = vcmask 228352   ;;  %vm5325_vm7 = vcmask 261120   ;;  %vm5327_vm8 = vcmask 293888  }
  0x13   :  { %v3748_v19 = vsub.s32 %v164_v15, %v166_v16  ;;  %s3705_s20 = smov 44   ;;  %s3706_s21 = smov 48   ;;  %vm5326_vm9 = vcmask 326656   ;;  %vm5308_vm10 = vcmask 359424   ;;  %vm5310_vm11 = vcmask 392192  }
  0x14   :  { %v3762_v33 = vsub.s32 %v195_v26, %v166_v16  ;;  %s3707_s22 = smov 52   ;;  %s5314_s23 = smov 56   ;;  %vm5309_vm12 = vcmask 424960   ;;  %vm5312_vm13 = vcmask 457728   ;;  %vm5311_vm14 = vcmask 490496  }
  0x15   :  { %s5306_s24 = smov 60   ;;  %s3710_s25 = smov 64   ;;  %vm5318_vm15 = vcmask 523264  }
  0x16   :  { %s3711_s26 = smov 68   ;;  %s5303_s27 = smov 72  }
  0x17   :  { %s3713_s28 = smov 76   ;;  %s3714_s29 = smov 80  }
  0x18   :  { %s5299_s30 = smov 84   ;;  %s3716_s2 = smov 88  }
  0x19   :  { %s3717_s3 = smov 92   ;;  %s5282_s4 = smov 96  }
  0x1a   :  { %s3719_s5 = smov 100   ;;  %s3720_s6 = smov 104  }
  0x1b   :  { %s3721_s7 = smov 108   ;;  %s5277_s8 = smov 112  }
  0x1c   :  { %s3723_s9 = smov 116   ;;  %s3724_s10 = smov 120  }
  0x4d   :  { %129 = vxpose.xlu1.b32.start.end [1/1] (short) %v3606_v4, 128  ;;  %65 = vxpose.xlu0.b32.start.end [1/1] (short) %v3605_v5, 128 }
  0x8c   :  { %v113_v6 = vpop.trf.xlu1  ;;  %v49_v7 = vpop.trf.xlu0 }
  0x8d   :  { %v183_v24 = vrot.slane %v113_v6, %v3748_v19  ;;  %v168_v25 = vrot.slane %v49_v7, %v3748_v19  ;;  %v176_v30 = vcombine.high %v113_v6, %v3694_v29  ;;  %v161_v31 = vcombine.high %v49_v7, %v3694_v29 }
  0x8f   :  { %v192_v32 = vcombine.high %v168_v25, %v183_v24  ;;  %v190_v36 = vrot.slane %v176_v30, %v3748_v19  ;;  %v175_v37 = vrot.slane %v161_v31, %v3748_v19  ;;  %v191_v39 = vcombine.low %v168_v25, %v183_v24 }
  0x90   :  { %v114_v8 = vpop.trf.xlu1  ;;  %v50_v9 = vpop.trf.xlu0 }
  0x91   :  { %v206_v38 = vrot.slane %v192_v32, %v3762_v33  ;;  %v207_v43 = vcombine.low %v175_v37, %v190_v36  ;;  %v3779_v44 = vrot.slane %v191_v39, %v3762_v33  ;;  %v249_v47 = vrot.slane %v114_v8, %v3748_v19 }
  0x92   :  { %v234_v48 = vrot.slane %v50_v9, %v3748_v19  ;;  %v208_v50 = vcombine.high %v175_v37, %v190_v36  ;;  %v242_v51 = vcombine.high %v114_v8, %v3694_v29  ;;  %v227_v55 = vcombine.high %v50_v9, %v3694_v29 }
  0x93   :  { %v224_v42 = vcombine.high %v206_v38, %v3694_v29  ;;  %v215_v49 = vrot.slane %v207_v43, %v3762_v33  ;;  %v223_v52 = vcombine.high %v3779_v44, %v3694_v29 }
  0x94   :  { %v3740_v13 = vpop.trf.xlu1  ;;  %v3742_v14 = vpop.trf.xlu0  ;;  %v257_v56 = vcombine.low %v234_v48, %v249_v47  ;;  %v222_v58 = vrot.slane %v208_v50, %v3762_v33  ;;  %v256_v59 = vrot.slane %v242_v51, %v3748_v19  ;;  %v241_v62 = vrot.slane %v227_v55, %v3748_v19 }
  0x95   :  { %v225_v57 = vcombine.high %v215_v49, %v3694_v29  ;;  %v258_v63 = vcombine.high %v234_v48, %v249_v47  ;;  %v315_v7 = vrot.slane %v3740_v13, %v3748_v19  ;;  %v300_v10 = vrot.slane %v3742_v14, %v3748_v19 }
  0x96   :  { %v226_v0 = vcombine.high %v222_v58, %v3694_v29  ;;  %v265_v1 = vrot.slane %v257_v56, %v3762_v33  ;;  %v273_v6 = vcombine.low %v241_v62, %v256_v59  ;;  %v274_v15 = vcombine.high %v241_v62, %v256_v59 }
  0x97   :  { %v272_v5 = vrot.slane %v258_v63, %v3762_v33  ;;  %v308_v16 = vcombine.high %v3740_v13, %v3694_v29  ;;  %v293_v24 = vcombine.high %v3742_v14, %v3694_v29  ;;  %v323_v25 = vcombine.low %v300_v10, %v315_v7 }
  0x98   :  { %v3744_v17 = vpop.trf.xlu1  ;;  %v3746_v18 = vpop.trf.xlu0  ;;  %v289_v4 = vcombine.high %v265_v1, %v3694_v29  ;;  %v281_v12 = vrot.slane %v273_v6, %v3762_v33  ;;  %v288_v30 = vrot.slane %v274_v15, %v3762_v33  ;;  %v324_v14 = vcombine.high %v300_v10, %v315_v7 }
  0x99   :  { %v290_v11 = vcombine.high %v272_v5, %v3694_v29  ;;  %v322_v13 = vrot.slane %v308_v16, %v3748_v19  ;;  %v307_v36 = vrot.slane %v293_v24, %v3748_v19  ;;  %v359_v63 = vcombine.high %v3746_v18, %v3694_v29 }
  0x9a   :  { %v291_v26 = vcombine.high %v281_v12, %v3694_v29  ;;  %v292_v37 = vcombine.high %v288_v30, %v3694_v29  ;;  %v338_v47 = vrot.slane %v324_v14, %v3762_v33 }
  0x9b   :  { %v339_v48 = vcombine.low %v307_v36, %v322_v13  ;;  %v373_v7 = vrot.slane %v359_v63, %v3748_v19 }
  0x9c   :  { %v3750_v22 = vpop.trf.xlu1  ;;  %v3752_v23 = vpop.trf.xlu0  ;;  %v356_v55 = vcombine.high %v338_v47, %v3694_v29 }
  0x9d   :  { %v347_v56 = vrot.slane %v339_v48, %v3762_v33 }
  0xa0   :  { %v3756_v27 = vpop.trf.xlu1  ;;  %v3758_v28 = vpop.trf.xlu0 }
  0xa4   :  { %v3764_v34 = vpop.trf.xlu1  ;;  %v3766_v35 = vpop.trf.xlu0 }
  0xa7   :  { %2278 = vrot.lane.b32.xlu1 %v206_v38, %s3695_s0  ;;  %v331_v38 = vrot.slane %v323_v25, %v3762_v33 }
  0xa8   :  { %v3772_v40 = vpop.trf.xlu1  ;;  %v3774_v41 = vpop.trf.xlu0 }
  0xa9   :  { %v355_v43 = vcombine.high %v331_v38, %v3694_v29 }
  0xab   :  { %2282 = vrot.lane.b32.xlu1 %v224_v42, %s3696_s11 }
  0xac   :  { %v3781_v45 = vpop.trf.xlu1  ;;  %v3783_v46 = vpop.trf.xlu0 }
  0xaf   :  { %2286 = vrot.lane.b32.xlu1 %v215_v49, %s3697_s12  ;;  %v381_v49 = vrot.slane %v3744_v17, %v3748_v19 }
  0xb0   :  { %v3792_v53 = vpop.trf.xlu1  ;;  %v3794_v54 = vpop.trf.xlu0 }
  0xb2   :  { %2274 = vrot.lane.b32.xlu0 %v223_v52, %s3698_s13  ;;  %v366_v52 = vrot.slane %v3746_v18, %v3748_v19 }
  0xb3   :  { %2290 = vrot.lane.b32.xlu1 %v225_v57, %s3699_s14  ;;  %v340_v57 = vcombine.high %v307_v36, %v322_v13 }
  0xb4   :  { %v3802_v60 = vpop.trf.xlu1  ;;  %v3804_v61 = vpop.trf.xlu0  ;;  %v390_v18 = vcombine.high %v366_v52, %v381_v49 }
  0xb6   :  { %2294 = vrot.lane.b32.xlu0 %v222_v58, %s3700_s15  ;;  %v374_v58 = vcombine.high %v3744_v17, %v3694_v29  ;;  %v404_v24 = vrot.slane %v390_v18, %v3762_v33 }
  0xb7   :  { %2298 = vrot.lane.b32.xlu1 %v226_v0, %s3701_s16  ;;  %v389_v0 = vcombine.low %v366_v52, %v381_v49 }
  0xb8   :  { %v3811_v2 = vpop.trf.xlu1  ;;  %v3813_v3 = vpop.trf.xlu0  ;;  %v388_v17 = vrot.slane %v374_v58, %v3748_v19  ;;  %v422_v36 = vcombine.high %v404_v24, %v3694_v29 }
  0xba   :  { %2302 = vrot.lane.b32.xlu0 %v265_v1, %s3702_s17  ;;  %v357_v1 = vcombine.high %v347_v56, %v3694_v29  ;;  %v405_v25 = vcombine.low %v373_v7, %v388_v17 }
  0xbb   :  { %2306 = vrot.lane.b32.xlu1 %v289_v4, %s3703_s18  ;;  %v354_v4 = vrot.slane %v340_v57, %v3762_v33 }
  0xbc   :  { %v3821_v8 = vpop.trf.xlu1  ;;  %v3823_v9 = vpop.trf.xlu0  ;;  %v413_v14 = vrot.slane %v405_v25, %v3762_v33 }
  0xbd   :  { %v358_v10 = vcombine.high %v354_v4, %v3694_v29 }
  0xbe   :  { %2310 = vrot.lane.b32.xlu0 %v272_v5, %s3704_s19  ;;  %v423_v52 = vcombine.high %v413_v14, %v3694_v29 }
  0xbf   :  { %2314 = vrot.lane.b32.xlu1 %v290_v11, %s3705_s20  ;;  %v397_v11 = vrot.slane %v389_v0, %v3762_v33 }
  0xc0   :  { %v3833_v20 = vpop.trf.xlu1  ;;  %v3835_v21 = vpop.trf.xlu0 }
  0xc1   :  { %v421_v16 = vcombine.high %v397_v11, %v3694_v29 }
  0xc2   :  { %2318 = vrot.lane.b32.xlu0 %v281_v12, %s3706_s21 }
  0xc3   :  { %2322 = vrot.lane.b32.xlu1 %v291_v26, %s3707_s22  ;;  %v447_v26 = vrot.slane %v3750_v22, %v3748_v19 }
  0xc4   :  { %v3844_v31 = vpop.trf.xlu1  ;;  %v3846_v32 = vpop.trf.xlu0 }
  0xc6   :  { %2326 = vrot.lane.b32.xlu0 %v288_v30, %s5314_s23  ;;  %v432_v30 = vrot.slane %v3752_v23, %v3748_v19 }
  0xc7   :  { %2330 = vrot.lane.b32.xlu1 %v292_v37, %s5306_s24  ;;  %v406_v37 = vcombine.high %v373_v7, %v388_v17 }
  0xc8   :  { %v3853_v39 = vpop.trf.xlu1  ;;  %v3855_v42 = vpop.trf.xlu0  ;;  %v455_v48 = vcombine.low %v432_v30, %v447_v26  ;;  %v456_v57 = vcombine.high %v432_v30, %v447_v26  ;;  %v506_v30 = vcombine.high %v3756_v27, %v3694_v29 }
  0xca   :  { %2334 = vrot.lane.b32.xlu0 %v331_v38, %s3710_s25  ;;  %v470_v17 = vrot.slane %v456_v57, %v3762_v33 }
  0xcb   :  { %2338 = vrot.lane.b32.xlu1 %v355_v43, %s3711_s26  ;;  %v440_v43 = vcombine.high %v3750_v22, %v3694_v29 }
  0xcc   :  { %v3863_v50 = vpop.trf.xlu1  ;;  %v3865_v51 = vpop.trf.xlu0 }
  0xce   :  { %2342 = vrot.lane.b32.xlu0 %v338_v47, %s5303_s27  ;;  %v425_v47 = vcombine.high %v3752_v23, %v3694_v29  ;;  %v3928_v23 = vrot.slane %v455_v48, %v3762_v33 }
  0xcf   :  { %2346 = vrot.lane.b32.xlu1 %v356_v55, %s3713_s28  ;;  %v420_v55 = vrot.slane %v406_v37, %v3762_v33 }
  0xd0   :  { %v3875_v59 = vpop.trf.xlu1  ;;  %v3877_v62 = vpop.trf.xlu0  ;;  %v439_v22 = vrot.slane %v425_v47, %v3748_v19 }
  0xd1   :  { %v424_v0 = vcombine.high %v420_v55, %v3694_v29 }
  0xd2   :  { %2350 = vrot.lane.b32.xlu0 %v347_v56, %s3714_s29  ;;  %v454_v56 = vrot.slane %v440_v43, %v3748_v19 }
  0xd3   :  { %2354 = vrot.lane.b32.xlu1 %v357_v1, %s5299_s30 }
  0xd4   :  { %v3886_v5 = vpop.trf.xlu1  ;;  %v3888_v6 = vpop.trf.xlu0  ;;  %v471_v1 = vcombine.low %v439_v22, %v454_v56 }
  0xd6   :  { %2358 = vrot.lane.b32.xlu0 %v354_v4, %s3716_s2  ;;  %v487_v4 = vcombine.high %v3928_v23, %v3694_v29  ;;  %v479_v25 = vrot.slane %v471_v1, %v3762_v33 }
  0xd7   :  { %2362 = vrot.lane.b32.xlu1 %v358_v10, %s3717_s3  ;;  %v472_v10 = vcombine.high %v439_v22, %v454_v56 }
  0xd8   :  { %v3895_v12 = vpop.trf.xlu1  ;;  %v3897_v15 = vpop.trf.xlu0  ;;  %v489_v37 = vcombine.high %v479_v25, %v3694_v29 }
  0xd9   :  { %v486_v43 = vrot.slane %v472_v10, %v3762_v33 }
  0xda   :  { %2366 = vrot.lane.b32.xlu0 %v397_v11, %s5282_s4  ;;  %v513_v11 = vrot.slane %v3756_v27, %v3748_v19 }
  0xdb   :  { %2370 = vrot.lane.b32.xlu1 %v421_v16, %s3719_s5  ;;  %v498_v16 = vrot.slane %v3758_v28, %v3748_v19 }
  0xdc   :  { %v3907_v13 = vpop.trf.xlu1  ;;  %v3912_v38 = vpop.trf.xlu0 }
  0xde   :  { %2374 = vrot.lane.b32.xlu0 %v404_v24, %s3720_s6  ;;  %v488_v24 = vcombine.high %v470_v17, %v3694_v29 }
  0xdf   :  { %2378 = vrot.lane.b32.xlu1 %v422_v36, %s3721_s7  ;;  %v491_v36 = vcombine.high %v3758_v28, %v3694_v29  ;;  %v490_v28 = vcombine.high %v486_v43, %v3694_v29 }
  0xe0   :  { %v3919_v49 = vpop.trf.xlu1  ;;  %v3930_v58 = vpop.trf.xlu0 }
  0xe1   :  { %v505_v27 = vrot.slane %v491_v36, %v3748_v19  ;;  %v572_v36 = vcombine.high %v3764_v34, %v3694_v29 }
  0xe2   :  { %2382 = vrot.lane.b32.xlu0 %v413_v14, %s5277_s8  ;;  %s5328_s8 = smov 124   ;;  %v521_v14 = vcombine.low %v498_v16, %v513_v11 }
  0xe3   :  { %2386 = vrot.lane.b32.xlu1 %v423_v52, %s3723_s9  ;;  %v520_v52 = vrot.slane %v506_v30, %v3748_v19 }
  0xe4   :  { %v3932_v63 = vpop.trf.xlu1  ;;  %v3943_v18 = vpop.trf.xlu0  ;;  %v529_v56 = vrot.slane %v521_v14, %v3762_v33  ;;  %v557_v14 = vcombine.high %v3766_v35, %v3694_v29 }
  0xe5   :  { %5334 = vst [vmem:[#allocation8_spill] sm:$0xff] %v3932_v63  ;;  %5336 = vst [vmem:[#allocation10_spill] sm:$0xff] %v3943_v18 }
  0xe6   :  { %2390 = vrot.lane.b32.xlu0 %v420_v55, %s3724_s10  ;;  %v522_v55 = vcombine.high %v498_v16, %v513_v11  ;;  %v553_v1 = vcombine.high %v529_v56, %v3694_v29  ;;  %v538_v11 = vcombine.high %v505_v27, %v520_v52  ;;  %v564_v16 = vrot.slane %v3766_v35, %v3748_v19 }
  0xe7   :  { %2394 = vrot.lane.b32.xlu1 %v424_v0, %s5328_s8  ;;  %v537_v0 = vcombine.low %v505_v27, %v520_v52 }
  0xe8   :  { %v3940_v7 = vpop.trf.xlu1  ;;  %v3962_v47 = vpop.trf.xlu0  ;;  %v552_v52 = vrot.slane %v538_v11, %v3762_v33 }
  0xe9   :  { %5335 = vst [vmem:[#allocation9_spill] sm:$0xff] %v3940_v7  ;;  %5338 = vst [vmem:[#allocation12_spill] sm:$0xff] %v3962_v47 }
  0xea   :  { %2398 = vrot.lane.b32.xlu0 %v487_v4, %s3698_s13  ;;  %v536_v4 = vrot.slane %v522_v55, %v3762_v33  ;;  %v556_v35 = vcombine.high %v552_v52, %v3694_v29 }
  0xeb   :  { %2402 = vrot.lane.b32.xlu1 %v470_v17, %s3695_s0  ;;  %v579_v17 = vrot.slane %v3764_v34, %v3748_v19  ;;  %v571_v34 = vrot.slane %v557_v14, %v3748_v19 }
  0xec   :  { %v3952_v26 = vpop.trf.xlu1  ;;  %v3975_v57 = vpop.trf.xlu0 }
  0xed   :  { %5337 = vst [vmem:[#allocation11_spill] sm:$0xff] %v3952_v26  ;;  %5341 = vst [vmem:[#allocation15_spill] sm:$0xff] %v3975_v57 }
  0xee   :  { %2406 = vrot.lane.b32.xlu0 %v488_v24, %s3696_s11  ;;  %v554_v24 = vcombine.high %v536_v4, %v3694_v29 }
  0xef   :  { %2410 = vrot.lane.b32.xlu1 %v479_v25, %s3697_s12  ;;  %v545_v25 = vrot.slane %v537_v0, %v3762_v33 }
  0xf0   :  { %v3964_v48 = vpop.trf.xlu1  ;;  %v3990_v30 = vpop.trf.xlu0 }
  0xf1   :  { %5339 = vst [vmem:[#allocation13_spill] sm:$0xff] %v3964_v48  ;;  %5343 = vst [vmem:[#allocation17_spill] sm:$0xff] %v3990_v30 }
  0xf2   :  { %2414 = vrot.lane.b32.xlu0 %v489_v37, %s3699_s14  ;;  %v587_v37 = vcombine.low %v564_v16, %v579_v17 }
  0xf3   :  { %2418 = vrot.lane.b32.xlu1 %v486_v43, %s3700_s15  ;;  %v555_v43 = vcombine.high %v545_v25, %v3694_v29 }
  0xf4   :  { %v3972_v22 = vpop.trf.xlu1  ;;  %v4003_v55 = vpop.trf.xlu0  ;;  %v595_v0 = vrot.slane %v587_v37, %v3762_v33 }
  0xf5   :  { %5340 = vst [vmem:[#allocation14_spill] sm:$0xff] %v3972_v22  ;;  %5345 = vst [vmem:[#allocation19_spill] sm:$0xff] %v4003_v55 }
  0xf6   :  { %2422 = vrot.lane.b32.xlu0 %v490_v28, %s3701_s16  ;;  %v586_v28 = vrot.slane %v572_v36, %v3748_v19  ;;  %v630_v36 = vrot.slane %v3774_v41, %v3748_v19 }
  0xf7   :  { %2426 = vrot.lane.b32.xlu1 %v529_v56, %s3702_s17  ;;  %v588_v56 = vcombine.high %v564_v16, %v579_v17  ;;  %v645_v16 = vrot.slane %v3772_v40, %v3748_v19 }
  0xf8   :  { %v3984_v10 = vpop.trf.xlu1  ;;  %v4014_v11 = vpop.trf.xlu0  ;;  %v604_v17 = vcombine.high %v571_v34, %v586_v28 }
  0xf9   :  { %5342 = vst [vmem:[#allocation16_spill] sm:$0xff] %v3984_v10  ;;  %5347 = vst [vmem:[#allocation21_spill] sm:$0xff] %v4014_v11 }
  0xfa   :  { %2430 = vrot.lane.b32.xlu0 %v553_v1, %s3703_s18 }
  0xfb   :  { %2434 = vrot.lane.b32.xlu1 %v536_v4, %s3704_s19  ;;  %v603_v4 = vcombine.low %v571_v34, %v586_v28  ;;  %v638_v28 = vcombine.high %v3772_v40, %v3694_v29  ;;  %v623_v34 = vcombine.high %v3774_v41, %v3694_v29 }
  0xfc   :  { %v4000_v27 = vpop.trf.xlu1 }
  0xfd   :  { %5344 = vst [vmem:[#allocation18_spill] sm:$0xff] %v4000_v27  ;;  %v611_v37 = vrot.slane %v603_v4, %v3762_v33  ;;  %v652_v4 = vrot.slane %v638_v28, %v3748_v19  ;;  %v637_v40 = vrot.slane %v623_v34, %v3748_v19 }
  0xfe   :  { %2438 = vrot.lane.b32.xlu0 %v554_v24, %s3705_s20  ;;  %v619_v24 = vcombine.high %v595_v0, %v3694_v29 }
  0xff   :  { %2442 = vrot.lane.b32.xlu1 %v545_v25, %s3706_s21  ;;  %v602_v25 = vrot.slane %v588_v56, %v3762_v33  ;;  %v653_v56 = vcombine.low %v630_v36, %v645_v16 }
 0x100   :  { %v4012_v1 = vpop.trf.xlu1 }
 0x101   :  { %5346 = vst [vmem:[#allocation20_spill] sm:$0xff] %v4012_v1  ;;  %v620_v14 = vcombine.high %v602_v25, %v3694_v29  ;;  %v661_v11 = vrot.slane %v653_v56, %v3762_v33  ;;  %v670_v56 = vcombine.high %v637_v40, %v652_v4 }
 0x102   :  { %2446 = vrot.lane.b32.xlu0 %v555_v43, %s3707_s22 }
 0x103   :  { %2450 = vrot.lane.b32.xlu1 %v552_v52, %s5314_s23  ;;  %v4028_v52 = vpop.trf.xlu0 }
 0x104   :  { %v4026_v43 = vpop.trf.xlu1  ;;  %5349 = vst [vmem:[#allocation23_spill] sm:$0xff] %v4028_v52 }
 0x105   :  { %5348 = vst [vmem:[#allocation22_spill] sm:$0xff] %v4026_v43 }
 0x106   :  { %2454 = vrot.lane.b32.xlu0 %v556_v35, %s5306_s24  ;;  %v621_v35 = vcombine.high %v611_v37, %v3694_v29 }
 0x107   :  { %2458 = vrot.lane.b32.xlu1 %v595_v0, %s3710_s25  ;;  %v618_v0 = vrot.slane %v604_v17, %v3762_v33  ;;  %v669_v17 = vcombine.low %v637_v40, %v652_v4  ;;  %v684_v40 = vrot.slane %v670_v56, %v3762_v33 }
 0x109   :  { %v622_v41 = vcombine.high %v618_v0, %v3694_v29 }
 0x10a   :  { %2462 = vrot.lane.b32.xlu0 %v619_v24, %s3711_s26  ;;  %v4041_v24 = vpop.trf.xlu1 }
 0x10b   :  { %2466 = vrot.lane.b32.xlu1 %v602_v25, %s5303_s27  ;;  %5350 = vst [vmem:[#allocation24_spill] sm:$0xff] %v4041_v24  ;;  %v654_v25 = vcombine.high %v630_v36, %v645_v16  ;;  %v696_v16 = vrot.slane %v3783_v46, %v3748_v19 }
 0x10d   :  { %v668_v28 = vrot.slane %v654_v25, %v3762_v33  ;;  %v704_v25 = vcombine.high %v3781_v45, %v3694_v29 }
 0x10e   :  { %2470 = vrot.lane.b32.xlu0 %v620_v14, %s3713_s28  ;;  %v4044_v14 = vpop.trf.xlu0 }
 0x10f   :  { %2474 = vrot.lane.b32.xlu1 %v611_v37, %s3714_s29  ;;  %5351 = vst [vmem:[#allocation25_spill] sm:$0xff] %v4044_v14  ;;  %v685_v37 = vcombine.high %v661_v11, %v3694_v29 }
 0x112   :  { %2478 = vrot.lane.b32.xlu0 %v621_v35, %s5299_s30  ;;  %v711_v35 = vrot.slane %v3781_v45, %v3748_v19  ;;  %v4058_v34 = vpop.trf.xlu0 }
 0x113   :  { %2482 = vrot.lane.b32.xlu1 %v618_v0, %s3716_s2  ;;  %5352 = vst [vmem:[#allocation26_spill] sm:$0xff] %v4058_v34  ;;  %v686_v0 = vcombine.high %v668_v28, %v3694_v29 }
 0x114   :  { %v719_v24 = vcombine.low %v696_v16, %v711_v35 }
 0x116   :  { %2486 = vrot.lane.b32.xlu0 %v622_v41, %s3717_s3  ;;  %v689_v41 = vcombine.high %v3783_v46, %v3694_v29  ;;  %v4079_v46 = vrot.slane %v719_v24, %v3762_v33 }
 0x117   :  { %2490 = vrot.lane.b32.xlu1 %v661_v11, %s5282_s4  ;;  %v677_v11 = vrot.slane %v669_v17, %v3762_v33  ;;  %s5353_s4 = smov 112   ;;  %v718_v17 = vrot.slane %v704_v25, %v3748_v19 }
 0x118   :  { %v703_v45 = vrot.slane %v689_v41, %v3748_v19  ;;  %v751_v25 = vcombine.high %v4079_v46, %v3694_v29  ;;  %v777_v41 = vrot.slane %v3792_v53, %v3748_v19 }
 0x119   :  { %v4056_v36 = vpop.permute.xlu1 %2278  ;;  %v687_v4 = vcombine.high %v677_v11, %v3694_v29 }
 0x11a   :  { %2494 = vrot.lane.b32.xlu0 %v685_v37, %s3719_s5  ;;  %v4072_v37 = vpop.trf.xlu0  ;;  %v736_v24 = vcombine.high %v703_v45, %v718_v17 }
 0x11b   :  { %2498 = vrot.lane.b32.xlu1 %v668_v28, %s3720_s6  ;;  %5354 = vst [vmem:[#allocation27_spill] sm:$0xff] %v4072_v37  ;;  %v720_v28 = vcombine.high %v696_v16, %v711_v35  ;;  %v735_v37 = vcombine.low %v703_v45, %v718_v17  ;;  %v770_v17 = vcombine.high %v3792_v53, %v3694_v29 }
 0x11c   :  { %v750_v14 = vrot.slane %v736_v24, %v3762_v33 }
 0x11d   :  { %v4068_v10 = vpop.permute.xlu1 %2282  ;;  %v734_v35 = vrot.slane %v720_v28, %v3762_v33  ;;  %v743_v55 = vrot.slane %v735_v37, %v3762_v33  ;;  %v755_v28 = vcombine.high %v3794_v54, %v3694_v29 }
 0x11e   :  { %2502 = vrot.lane.b32.xlu0 %v686_v0, %s3721_s7 }
 0x11f   :  { %2506 = vrot.lane.b32.xlu1 %v677_v11, %s5353_s4  ;;  %v688_v11 = vcombine.high %v684_v40, %v3694_v29  ;;  %v752_v43 = vcombine.high %v734_v35, %v3694_v29  ;;  %v753_v22 = vcombine.high %v743_v55, %v3694_v29  ;;  %v769_v53 = vrot.slane %v755_v28, %v3748_v19 }
 0x121   :  { %v4081_v34 = vpop.permute.xlu1 %2286 }
 0x122   :  { %2510 = vrot.lane.b32.xlu0 %v687_v4, %s3723_s9  ;;  %v762_v4 = vrot.slane %v3794_v54, %v3748_v19  ;;  %v754_v54 = vcombine.high %v750_v14, %v3694_v29 }
 0x123   :  { %2514 = vrot.lane.b32.xlu1 %v684_v40, %s3724_s10 }
 0x124   :  { %v4085_v0 = vpop.permute.xlu0 %2274 }
 0x125   :  { %v4088_v56 = vpop.permute.xlu1 %2290 }
 0x126   :  { %2518 = vrot.lane.b32.xlu0 %v688_v11, %s5328_s8  ;;  %v785_v11 = vcombine.low %v762_v4, %v777_v41 }
 0x127   :  { %2522 = vrot.lane.b32.xlu1 %v751_v25, %s3698_s13 }
 0x128   :  { %v4095_v16 = vpop.permute.xlu0 %2294  ;;  %v793_v52 = vrot.slane %v785_v11, %v3762_v33  ;;  %v828_v11 = vrot.slane %v3804_v61, %v3748_v19 }
 0x129   :  { %v4101_v40 = vpop.permute.xlu1 %2298 }
 0x12a   :  { %2526 = vrot.lane.b32.xlu0 %v734_v35, %s3695_s0  ;;  %v786_v35 = vcombine.high %v762_v4, %v777_v41  ;;  %v843_v41 = vrot.slane %v3802_v60, %v3748_v19 }
 0x12b   :  { %2530 = vrot.lane.b32.xlu1 %v752_v43, %s3696_s11  ;;  %v784_v43 = vrot.slane %v770_v17, %v3748_v19  ;;  %v817_v17 = vcombine.high %v793_v52, %v3694_v29 }
 0x12c   :  { %v4109_v45 = vpop.permute.xlu0 %2302  ;;  %v800_v28 = vrot.slane %v786_v35, %v3762_v33 }
 0x12d   :  { %v4113_v25 = vpop.permute.xlu1 %2306 }
 0x12e   :  { %2534 = vrot.lane.b32.xlu0 %v743_v55, %s3697_s12  ;;  %v818_v27 = vcombine.high %v800_v28, %v3694_v29 }
 0x12f   :  { %2538 = vrot.lane.b32.xlu1 %v753_v22, %s3699_s14  ;;  %v801_v22 = vcombine.low %v769_v53, %v784_v43 }
 0x130   :  { %v4120_v37 = vpop.permute.xlu0 %2310 }
 0x131   :  { %v4123_v1 = vpop.permute.xlu1 %2314  ;;  %v809_v30 = vrot.slane %v801_v22, %v3762_v33 }
 0x132   :  { %2542 = vrot.lane.b32.xlu0 %v750_v14, %s3700_s15  ;;  %v802_v14 = vcombine.high %v769_v53, %v784_v43  ;;  %v821_v43 = vcombine.high %v3804_v61, %v3694_v29  ;;  %v851_v53 = vcombine.low %v828_v11, %v843_v41 }
 0x133   :  { %2546 = vrot.lane.b32.xlu1 %v754_v54, %s3701_s16  ;;  %v819_v48 = vcombine.high %v809_v30, %v3694_v29 }
 0x134   :  { %v4129_v55 = vpop.permute.xlu0 %2318  ;;  %v816_v57 = vrot.slane %v802_v14, %v3762_v33  ;;  %v859_v47 = vrot.slane %v851_v53, %v3762_v33  ;;  %v894_v53 = vrot.slane %v3813_v3, %v3748_v19 }
 0x135   :  { %v4131_v24 = vpop.permute.xlu1 %2322 }
 0x136   :  { %5355 = vst [vmem:[#allocation28_spill] sm:$0xff] %v4131_v24  ;;  %2550 = vrot.lane.b32.xlu0 %v793_v52, %s3702_s17  ;;  %v836_v52 = vcombine.high %v3802_v60, %v3694_v29  ;;  %v835_v60 = vrot.slane %v821_v43, %v3748_v19  ;;  %v820_v61 = vcombine.high %v816_v57, %v3694_v29 }
 0x137   :  { %2554 = vrot.lane.b32.xlu1 %v817_v17, %s3703_s18 }
 0x138   :  { %v4139_v4 = vpop.permute.xlu0 %2326 }
 0x139   :  { %5356 = vst [vmem:[#allocation29_spill] sm:$0xff] %v4139_v4  ;;  %v4143_v54 = vpop.permute.xlu1 %2330 }
 0x13a   :  { %5357 = vst [vmem:[#allocation30_spill] sm:$0xff] %v4143_v54  ;;  %2558 = vrot.lane.b32.xlu0 %v800_v28, %s3704_s19  ;;  %v852_v28 = vcombine.high %v828_v11, %v843_v41 }
 0x13b   :  { %2562 = vrot.lane.b32.xlu1 %v818_v27, %s3705_s20  ;;  %v850_v27 = vrot.slane %v836_v52, %v3748_v19  ;;  %v883_v52 = vcombine.high %v859_v47, %v3694_v29 }
 0x13c   :  { %v4151_v35 = vpop.permute.xlu0 %2334  ;;  %v866_v43 = vrot.slane %v852_v28, %v3762_v33 }
 0x13d   :  { %5358 = vst [vmem:[#allocation31_spill] sm:$0xff] %v4151_v35  ;;  %v4155_v17 = vpop.permute.xlu1 %2338  ;;  %v868_v41 = vcombine.high %v835_v60, %v850_v27 }
 0x13e   :  { %5359 = vst [vmem:[#allocation32_spill] sm:$0xff] %v4155_v17  ;;  %2566 = vrot.lane.b32.xlu0 %v809_v30, %s3706_s21  ;;  %v884_v7 = vcombine.high %v866_v43, %v3694_v29 }
 0x13f   :  { %2570 = vrot.lane.b32.xlu1 %v819_v48, %s3707_s22  ;;  %v867_v48 = vcombine.low %v835_v60, %v850_v27  ;;  %v887_v60 = vcombine.high %v3813_v3, %v3694_v29 }
 0x140   :  { %v4162_v22 = vpop.permute.xlu0 %2342 }
 0x141   :  { %5360 = vst [vmem:[#allocation33_spill] sm:$0xff] %v4162_v22  ;;  %v4165_v26 = vpop.permute.xlu1 %2346 }
 0x142   :  { %5361 = vst [vmem:[#allocation34_spill] sm:$0xff] %v4165_v26  ;;  %2574 = vrot.lane.b32.xlu0 %v816_v57, %s5314_s23  ;;  %v909_v57 = vrot.slane %v3811_v2, %v3748_v19 }
 0x143   :  { %2578 = vrot.lane.b32.xlu1 %v820_v61, %s5306_s24 }
 0x144   :  { %v4171_v30 = vpop.permute.xlu0 %2350  ;;  %v917_v28 = vcombine.low %v894_v53, %v909_v57 }
 0x145   :  { %5362 = vst [vmem:[#allocation35_spill] sm:$0xff] %v4171_v30  ;;  %v4173_v14 = vpop.permute.xlu1 %2354 }
 0x146   :  { %5363 = vst [vmem:[#allocation36_spill] sm:$0xff] %v4173_v14  ;;  %2582 = vrot.lane.b32.xlu0 %v859_v47, %s3710_s25  ;;  %v875_v14 = vrot.slane %v867_v48, %v3762_v33  ;;  %v902_v47 = vcombine.high %v3811_v2, %v3694_v29  ;;  %v901_v2 = vrot.slane %v887_v60, %v3748_v19 }
 0x147   :  { %2586 = vrot.lane.b32.xlu1 %v883_v52, %s3711_s26 }
 0x148   :  { %v4179_v11 = vpop.permute.xlu0 %2358 }
 0x149   :  { %5364 = vst [vmem:[#allocation37_spill] sm:$0xff] %v4179_v11  ;;  %v4185_v61 = vpop.permute.xlu1 %2362  ;;  %v882_v11 = vrot.slane %v868_v41, %v3762_v33 }
 0x14a   :  { %5365 = vst [vmem:[#allocation38_spill] sm:$0xff] %v4185_v61  ;;  %2590 = vrot.lane.b32.xlu0 %v866_v43, %s5303_s27  ;;  %v885_v61 = vcombine.high %v875_v14, %v3694_v29  ;;  %v918_v43 = vcombine.high %v894_v53, %v909_v57  ;;  %v975_v57 = vrot.slane %v3821_v8, %v3748_v19 }
 0x14b   :  { %2594 = vrot.lane.b32.xlu1 %v884_v7, %s3713_s28  ;;  %v916_v7 = vrot.slane %v902_v47, %v3748_v19  ;;  %v886_v3 = vcombine.high %v882_v11, %v3694_v29 }
 0x14c   :  { %v4193_v27 = vpop.permute.xlu0 %2366  ;;  %v932_v60 = vrot.slane %v918_v43, %v3762_v33  ;;  %v953_v43 = vcombine.high %v3823_v9, %v3694_v29 }
 0x14d   :  { %5366 = vst [vmem:[#allocation39_spill] sm:$0xff] %v4193_v27  ;;  %v4197_v52 = vpop.permute.xlu1 %2370  ;;  %v933_v41 = vcombine.low %v901_v2, %v916_v7 }
 0x14e   :  { %5367 = vst [vmem:[#allocation40_spill] sm:$0xff] %v4197_v52  ;;  %2598 = vrot.lane.b32.xlu0 %v875_v14, %s3714_s29  ;;  %v925_v52 = vrot.slane %v917_v28, %v3762_v33  ;;  %v934_v28 = vcombine.high %v901_v2, %v916_v7 }
 0x14f   :  { %2602 = vrot.lane.b32.xlu1 %v885_v61, %s5299_s30  ;;  %s5372_s30 = smov 96  }
 0x150   :  { %v4204_v48 = vpop.permute.xlu0 %2374  ;;  %v949_v47 = vcombine.high %v925_v52, %v3694_v29 }
 0x151   :  { %5368 = vst [vmem:[#allocation41_spill] sm:$0xff] %v4204_v48  ;;  %v4207_v27 = vpop.permute.xlu1 %2378 }
 0x152   :  { %5369 = vst [vmem:[#allocation42_spill] sm:$0xff] %v4207_v27  ;;  %2606 = vrot.lane.b32.xlu0 %v882_v11, %s3716_s2  ;;  %v960_v11 = vrot.slane %v3823_v9, %v3748_v19 }
 0x153   :  { %2610 = vrot.lane.b32.xlu1 %v886_v3, %s3717_s3 }
 0x154   :  { %v4213_v14 = vpop.permute.xlu0 %2382 }
 0x155   :  { %5370 = vst [vmem:[#allocation43_spill] sm:$0xff] %v4213_v14  ;;  %v4215_v61 = vpop.permute.xlu1 %2386  ;;  %v941_v14 = vrot.slane %v933_v41, %v3762_v33 }
 0x156   :  { %5371 = vst [vmem:[#allocation44_spill] sm:$0xff] %v4215_v61  ;;  %2614 = vrot.lane.b32.xlu0 %v925_v52, %s5372_s30  ;;  %v950_v61 = vcombine.high %v932_v60, %v3694_v29  ;;  %v968_v52 = vcombine.high %v3821_v8, %v3694_v29  ;;  %v967_v8 = vrot.slane %v953_v43, %v3748_v19 }
 0x157   :  { %2618 = vrot.lane.b32.xlu1 %v949_v47, %s3719_s5  ;;  %v983_v47 = vcombine.low %v960_v11, %v975_v57  ;;  %v951_v2 = vcombine.high %v941_v14, %v3694_v29 }
 0x158   :  { %v4225_v53 = vpop.permute.xlu0 %2390  ;;  %v982_v41 = vrot.slane %v968_v52, %v3748_v19 }
 0x159   :  { %5373 = vst [vmem:[#allocation45_spill] sm:$0xff] %v4225_v53  ;;  %v4227_v3 = vpop.permute.xlu1 %2394  ;;  %v4248_v9 = vrot.slane %v983_v47, %v3762_v33 }
 0x15a   :  { %5374 = vst [vmem:[#allocation46_spill] sm:$0xff] %v4227_v3  ;;  %2622 = vrot.lane.b32.xlu0 %v932_v60, %s3720_s6  ;;  %v948_v3 = vrot.slane %v934_v28, %v3762_v33  ;;  %v1000_v43 = vcombine.high %v967_v8, %v982_v41 }
 0x15b   :  { %2626 = vrot.lane.b32.xlu1 %v950_v61, %s3721_s7  ;;  %v984_v61 = vcombine.high %v960_v11, %v975_v57  ;;  %v1015_v52 = vcombine.high %v4248_v9, %v3694_v29 }
 0x15c   :  { %v4237_v27 = vpop.permute.xlu0 %2398  ;;  %v952_v48 = vcombine.high %v948_v3, %v3694_v29 }
 0x15d   :  { %v4239_v7 = vpop.permute.xlu1 %2402  ;;  %v998_v57 = vrot.slane %v984_v61, %v3762_v33 }
 0x15e   :  { %2630 = vrot.lane.b32.xlu0 %v941_v14, %s5353_s4  ;;  %v999_v14 = vcombine.low %v967_v8, %v982_v41  ;;  %v1034_v41 = vcombine.high %v3833_v20, %v3694_v29  ;;  %v1019_v8 = vcombine.high %v3835_v21, %v3694_v29 }
 0x15f   :  { %2634 = vrot.lane.b32.xlu1 %v951_v2, %s3723_s9  ;;  %v1016_v2 = vcombine.high %v998_v57, %v3694_v29 }
 0x160   :  { %v4250_v60 = vpop.permute.xlu0 %2406  ;;  %v1007_v30 = vrot.slane %v999_v14, %v3762_v33 }
 0x161   :  { %v4252_v53 = vpop.permute.xlu1 %2410 }
 0x162   :  { %2638 = vrot.lane.b32.xlu0 %v948_v3, %s3724_s10  ;;  %v1041_v3 = vrot.slane %v3833_v20, %v3748_v19  ;;  %v1017_v22 = vcombine.high %v1007_v30, %v3694_v29  ;;  %v1033_v20 = vrot.slane %v1019_v8, %v3748_v19 }
 0x163   :  { %2642 = vrot.lane.b32.xlu1 %v952_v48, %s5328_s8  ;;  %v1026_v48 = vrot.slane %v3835_v21, %v3748_v19 }
 0x164   :  { %v4257_v28 = vpop.permute.xlu0 %2414 }
 0x165   :  { %v4262_v11 = vpop.permute.xlu1 %2418  ;;  %v1050_v17 = vcombine.high %v1026_v48, %v1041_v3 }
 0x166   :  { %2646 = vrot.lane.b32.xlu0 %v1015_v52, %s3698_s13  ;;  %v1049_v52 = vcombine.low %v1026_v48, %v1041_v3  ;;  %v1107_v48 = vrot.slane %v3844_v31, %v3748_v19 }
 0x167   :  { %2650 = vrot.lane.b32.xlu1 %v998_v57, %s3695_s0  ;;  %v1014_v57 = vrot.slane %v1000_v43, %v3762_v33  ;;  %v1064_v8 = vrot.slane %v1050_v17, %v3762_v33 }
 0x168   :  { %v4270_v47 = vpop.permute.xlu0 %2422  ;;  %v1057_v54 = vrot.slane %v1049_v52, %v3762_v33 }
 0x169   :  { %v4274_v61 = vpop.permute.xlu1 %2426  ;;  %v1018_v21 = vcombine.high %v1014_v57, %v3694_v29  ;;  %v1082_v18 = vcombine.high %v1064_v8, %v3694_v29 }
 0x16a   :  { %2654 = vrot.lane.b32.xlu0 %v1016_v2, %s3696_s11  ;;  %v1048_v2 = vrot.slane %v1034_v41, %v3748_v19  ;;  %v1081_v41 = vcombine.high %v1057_v54, %v3694_v29 }
 0x16b   :  { %2658 = vrot.lane.b32.xlu1 %v1007_v30, %s3697_s12 }
 0x16c   :  { %v4282_v26 = vpop.permute.xlu0 %2430  ;;  %v1066_v52 = vcombine.high %v1033_v20, %v1048_v2 }
 0x16d   :  { %v4286_v14 = vpop.permute.xlu1 %2434 }
 0x16e   :  { %2662 = vrot.lane.b32.xlu0 %v1017_v22, %s3699_s14  ;;  %v1065_v22 = vcombine.low %v1033_v20, %v1048_v2  ;;  %v1085_v2 = vcombine.high %v3846_v32, %v3694_v29 }
 0x16f   :  { %2666 = vrot.lane.b32.xlu1 %v1014_v57, %s3700_s15  ;;  %v1092_v57 = vrot.slane %v3846_v32, %v3748_v19 }
 0x170   :  { %v4292_v35 = vpop.permute.xlu0 %2438 }
 0x171   :  { %v4296_v30 = vpop.permute.xlu1 %2442  ;;  %v1115_v20 = vcombine.low %v1092_v57, %v1107_v48 }
 0x172   :  { %2670 = vrot.lane.b32.xlu0 %v1018_v21, %s3701_s16 }
 0x173   :  { %2674 = vrot.lane.b32.xlu1 %v1057_v54, %s3702_s17  ;;  %v1073_v54 = vrot.slane %v1065_v22, %v3762_v33 }
 0x174   :  { %v4300_v43 = vpop.permute.xlu0 %2446 }
 0x175   :  { %5375 = vst [vmem:[#allocation47_spill] sm:$0xff] %v4300_v43  ;;  %v4304_v3 = vpop.permute.xlu1 %2450 }
 0x176   :  { %5376 = vst [vmem:[#allocation48_spill] sm:$0xff] %v4304_v3  ;;  %2678 = vrot.lane.b32.xlu0 %v1081_v41, %s3703_s18  ;;  %v1100_v41 = vcombine.high %v3844_v31, %v3694_v29  ;;  %v1099_v31 = vrot.slane %v1085_v2, %v3748_v19 }
 0x177   :  { %2682 = vrot.lane.b32.xlu1 %v1064_v8, %s3704_s19  ;;  %v1080_v8 = vrot.slane %v1066_v52, %v3762_v33 }
 0x178   :  { %v4312_v21 = vpop.permute.xlu0 %2454 }
 0x179   :  { %5377 = vst [vmem:[#allocation49_spill] sm:$0xff] %v4312_v21  ;;  %v4316_v17 = vpop.permute.xlu1 %2458  ;;  %v1083_v21 = vcombine.high %v1073_v54, %v3694_v29  ;;  %v1084_v32 = vcombine.high %v1080_v8, %v3694_v29 }
 0x17a   :  { %5378 = vst [vmem:[#allocation50_spill] sm:$0xff] %v4316_v17  ;;  %2686 = vrot.lane.b32.xlu0 %v1082_v18, %s3705_s20  ;;  %v1114_v18 = vrot.slane %v1100_v41, %v3748_v19  ;;  %v1116_v17 = vcombine.high %v1092_v57, %v1107_v48 }
 0x17b   :  { %2690 = vrot.lane.b32.xlu1 %v1073_v54, %s3706_s21 }
 0x17c   :  { %v4324_v63 = vpop.permute.xlu0 %2462  ;;  %v1131_v52 = vcombine.low %v1099_v31, %v1114_v18  ;;  %v1130_v2 = vrot.slane %v1116_v17, %v3762_v33  ;;  %v1132_v57 = vcombine.high %v1099_v31, %v1114_v18  ;;  %v1166_v18 = vcombine.high %v3853_v39, %v3694_v29 }
 0x17d   :  { %5379 = vst [vmem:[#allocation51_spill] sm:$0xff] %v4324_v63  ;;  %v4328_v22 = vpop.permute.xlu1 %2466  ;;  %v1123_v63 = vrot.slane %v1115_v20, %v3762_v33  ;;  %v1173_v20 = vrot.slane %v3853_v39, %v3748_v19  ;;  %v1151_v31 = vcombine.high %v3855_v42, %v3694_v29 }
 0x17e   :  { %5380 = vst [vmem:[#allocation52_spill] sm:$0xff] %v4328_v22  ;;  %2694 = vrot.lane.b32.xlu0 %v1083_v21, %s3707_s22 }
 0x17f   :  { %2698 = vrot.lane.b32.xlu1 %v1080_v8, %s5314_s23  ;;  %v1147_v41 = vcombine.high %v1123_v63, %v3694_v29  ;;  %v1158_v8 = vrot.slane %v3855_v42, %v3748_v19  ;;  %v1165_v39 = vrot.slane %v1151_v31, %v3748_v19 }
 0x180   :  { %v4334_v3 = vpop.permute.xlu0 %2470 }
 0x181   :  { %5381 = vst [vmem:[#allocation53_spill] sm:$0xff] %v4334_v3  ;;  %v4338_v54 = vpop.permute.xlu1 %2474 }
 0x182   :  { %5382 = vst [vmem:[#allocation54_spill] sm:$0xff] %v4338_v54  ;;  %2702 = vrot.lane.b32.xlu0 %v1084_v32, %s5306_s24 }
 0x183   :  { %2706 = vrot.lane.b32.xlu1 %v1123_v63, %s3710_s25  ;;  %v1139_v63 = vrot.slane %v1131_v52, %v3762_v33 }
 0x184   :  { %v4342_v21 = vpop.permute.xlu0 %2478 }
 0x185   :  { %5383 = vst [vmem:[#allocation55_spill] sm:$0xff] %v4342_v21  ;;  %v4346_v48 = vpop.permute.xlu1 %2482  ;;  %v1148_v21 = vcombine.high %v1130_v2, %v3694_v29 }
 0x186   :  { %5384 = vst [vmem:[#allocation56_spill] sm:$0xff] %v4346_v48  ;;  %2710 = vrot.lane.b32.xlu0 %v1147_v41, %s3711_s26  ;;  %v1181_v41 = vcombine.low %v1158_v8, %v1173_v20 }
 0x187   :  { %2714 = vrot.lane.b32.xlu1 %v1130_v2, %s5303_s27  ;;  %v1146_v2 = vrot.slane %v1132_v57, %v3762_v33  ;;  %s5389_s27 = smov 84  }
 0x188   :  { %v4354_v32 = vpop.permute.xlu0 %2486 }
 0x189   :  { %5385 = vst [vmem:[#allocation57_spill] sm:$0xff] %v4354_v32  ;;  %v4358_v17 = vpop.permute.xlu1 %2490  ;;  %v1149_v32 = vcombine.high %v1139_v63, %v3694_v29  ;;  %v1150_v42 = vcombine.high %v1146_v2, %v3694_v29 }
 0x18a   :  { %5386 = vst [vmem:[#allocation58_spill] sm:$0xff] %v4358_v17  ;;  %2718 = vrot.lane.b32.xlu0 %v1148_v21, %s3713_s28  ;;  %v1180_v21 = vrot.slane %v1166_v18, %v3748_v19  ;;  %v1182_v17 = vcombine.high %v1158_v8, %v1173_v20  ;;  %v1239_v20 = vrot.slane %v3863_v50, %v3748_v19 }
 0x18b   :  { %2722 = vrot.lane.b32.xlu1 %v1139_v63, %s3714_s29  ;;  %v1224_v8 = vrot.slane %v3865_v51, %v3748_v19 }
 0x18c   :  { %v4366_v48 = vpop.permute.xlu0 %2494  ;;  %v1197_v57 = vcombine.low %v1165_v39, %v1180_v21  ;;  %v1196_v31 = vrot.slane %v1182_v17, %v3762_v33  ;;  %v1232_v17 = vcombine.high %v3863_v50, %v3694_v29 }
 0x18d   :  { %5387 = vst [vmem:[#allocation59_spill] sm:$0xff] %v4366_v48  ;;  %v4370_v52 = vpop.permute.xlu1 %2498  ;;  %v1189_v48 = vrot.slane %v1181_v41, %v3762_v33 }
 0x18e   :  { %5388 = vst [vmem:[#allocation60_spill] sm:$0xff] %v4370_v52  ;;  %2726 = vrot.lane.b32.xlu0 %v1149_v32, %s5389_s27 }
 0x18f   :  { %2730 = vrot.lane.b32.xlu1 %v1146_v2, %s3716_s2  ;;  %v1213_v18 = vcombine.high %v1189_v48, %v3694_v29  ;;  %v1198_v2 = vcombine.high %v1165_v39, %v1180_v21 }
 0x190   :  { %v4376_v54 = vpop.permute.xlu0 %2502 }
 0x191   :  { %5390 = vst [vmem:[#allocation61_spill] sm:$0xff] %v4376_v54  ;;  %v4380_v63 = vpop.permute.xlu1 %2506  ;;  %v1247_v54 = vcombine.low %v1224_v8, %v1239_v20 }
 0x192   :  { %5391 = vst [vmem:[#allocation62_spill] sm:$0xff] %v4380_v63  ;;  %2734 = vrot.lane.b32.xlu0 %v1150_v42, %s3717_s3  ;;  %v1217_v63 = vcombine.high %v3865_v51, %v3694_v29 }
 0x193   :  { %2738 = vrot.lane.b32.xlu1 %v1189_v48, %s5372_s30  ;;  %v1205_v48 = vrot.slane %v1197_v57, %v3762_v33  ;;  %v1246_v57 = vrot.slane %v1232_v17, %v3748_v19  ;;  %v4415_v51 = vrot.slane %v1247_v54, %v3762_v33  ;;  %v1305_v17 = vrot.slane %v3875_v59, %v3748_v19 }
 0x194   :  { %v4384_v32 = vpop.permute.xlu0 %2510  ;;  %v1231_v50 = vrot.slane %v1217_v63, %v3748_v19 }
 0x195   :  { %5392 = vst [vmem:[#allocation63_spill] sm:$0xff] %v4384_v32  ;;  %v4392_v41 = vpop.permute.xlu1 %2514  ;;  %v1214_v32 = vcombine.high %v1196_v31, %v3694_v29  ;;  %v1215_v39 = vcombine.high %v1205_v48, %v3694_v29  ;;  %5395 = vst [vmem:[#allocation66_spill] sm:$0xff] %v4415_v51  ;;  %v1279_v63 = vcombine.high %v4415_v51, %v3694_v29 }
 0x196   :  { %5393 = vst [vmem:[#allocation64_spill] sm:$0xff] %v4392_v41  ;;  %2742 = vrot.lane.b32.xlu0 %v1213_v18, %s3719_s5  ;;  %v1212_v18 = vrot.slane %v1198_v2, %v3762_v33  ;;  %v1263_v41 = vcombine.low %v1231_v50, %v1246_v57  ;;  %v1264_v54 = vcombine.high %v1231_v50, %v1246_v57 }
 0x197   :  { %2746 = vrot.lane.b32.xlu1 %v1196_v31, %s3720_s6  ;;  %v1248_v31 = vcombine.high %v1224_v8, %v1239_v20  ;;  %v1298_v57 = vcombine.high %v3875_v59, %v3694_v29 }
 0x198   :  { %v4396_v42 = vpop.permute.xlu0 %2518  ;;  %v1271_v51 = vrot.slane %v1263_v41, %v3762_v33  ;;  %v1278_v4 = vrot.slane %v1264_v54, %v3762_v33 }
 0x199   :  { %5394 = vst [vmem:[#allocation65_spill] sm:$0xff] %v4396_v42  ;;  %v4404_v52 = vpop.permute.xlu1 %2522  ;;  %v1262_v20 = vrot.slane %v1248_v31, %v3762_v33  ;;  %v1283_v31 = vcombine.high %v3877_v62, %v3694_v29 }
 0x19a   :  { %2750 = vrot.lane.b32.xlu0 %v1214_v32, %s3721_s7  ;;  %v1281_v22 = vcombine.high %v1271_v51, %v3694_v29 }
 0x19b   :  { %2754 = vrot.lane.b32.xlu1 %v1205_v48, %s5353_s4  ;;  %v1216_v48 = vcombine.high %v1212_v18, %v3694_v29  ;;  %v1280_v3 = vcombine.high %v1262_v20, %v3694_v29  ;;  %v1297_v59 = vrot.slane %v1283_v31, %v3748_v19 }
 0x19c   :  { %v4408_v21 = vpop.permute.xlu0 %2526 }
 0x19d   :  { %v4417_v42 = vpop.permute.xlu1 %2530 }
 0x19e   :  { %2758 = vrot.lane.b32.xlu0 %v1215_v39, %s3723_s9  ;;  %v1290_v39 = vrot.slane %v3877_v62, %v3748_v19  ;;  %v1282_v62 = vcombine.high %v1278_v4, %v3694_v29 }
 0x19f   :  { %2762 = vrot.lane.b32.xlu1 %v1212_v18, %s3724_s10 }
 0x1a0   :  { %v4421_v32 = vpop.permute.xlu0 %2534 }
 0x1a1   :  { %v4424_v2 = vpop.permute.xlu1 %2538 }
 0x1a2   :  { %2766 = vrot.lane.b32.xlu0 %v1216_v48, %s5328_s8  ;;  %v1313_v48 = vcombine.low %v1290_v39, %v1305_v17 }
 0x1a3   :  { %2770 = vrot.lane.b32.xlu1 %v1279_v63, %s3698_s13 }
 0x1a4   :  { %v4431_v8 = vpop.permute.xlu0 %2542  ;;  %v1321_v43 = vrot.slane %v1313_v48, %v3762_v33  ;;  %v1356_v48 = vrot.slane %v3888_v6, %v3748_v19 }
 0x1a5   :  { %v4437_v18 = vpop.permute.xlu1 %2546 }
 0x1a6   :  { %2774 = vrot.lane.b32.xlu0 %v1262_v20, %s3695_s0  ;;  %v1314_v20 = vcombine.high %v1290_v39, %v1305_v17  ;;  %v1371_v17 = vrot.slane %v3886_v5, %v3748_v19 }
 0x1a7   :  { %2778 = vrot.lane.b32.xlu1 %v1280_v3, %s3696_s11  ;;  %v1312_v3 = vrot.slane %v1298_v57, %v3748_v19  ;;  %v1345_v57 = vcombine.high %v1321_v43, %v3694_v29 }
 0x1a8   :  { %v4445_v50 = vpop.permute.xlu0 %2550  ;;  %v1328_v31 = vrot.slane %v1314_v20, %v3762_v33 }
 0x1a9   :  { %v4449_v63 = vpop.permute.xlu1 %2554 }
 0x1aa   :  { %2782 = vrot.lane.b32.xlu0 %v1271_v51, %s3697_s12 }
 0x1ab   :  { %2786 = vrot.lane.b32.xlu1 %v1281_v22, %s3699_s14  ;;  %v1329_v22 = vcombine.low %v1297_v59, %v1312_v3 }
 0x1ac   :  { %v4456_v41 = vpop.permute.xlu0 %2558 }
 0x1ad   :  { %v4459_v24 = vpop.permute.xlu1 %2562 }
 0x1ae   :  { %2790 = vrot.lane.b32.xlu0 %v1278_v4, %s3700_s15  ;;  %v1330_v4 = vcombine.high %v1297_v59, %v1312_v3  ;;  %v1349_v3 = vcombine.high %v3888_v6, %v3694_v29  ;;  %v1379_v59 = vcombine.low %v1356_v48, %v1371_v17 }
 0x1af   :  { %2794 = vrot.lane.b32.xlu1 %v1282_v62, %s3701_s16 }
 0x1b0   :  { %v4465_v51 = vpop.permute.xlu0 %2566 }
 0x1b1   :  { %5396 = vst [vmem:[#allocation67_spill] sm:$0xff] %v4465_v51  ;;  %v4467_v54 = vpop.permute.xlu1 %2570  ;;  %v1337_v51 = vrot.slane %v1329_v22, %v3762_v33 }
 0x1b2   :  { %5397 = vst [vmem:[#allocation68_spill] sm:$0xff] %v4467_v54  ;;  %2798 = vrot.lane.b32.xlu0 %v1321_v43, %s3702_s17  ;;  %v1346_v54 = vcombine.high %v1328_v31, %v3694_v29  ;;  %v1364_v43 = vcombine.high %v3886_v5, %v3694_v29  ;;  %v1363_v5 = vrot.slane %v1349_v3, %v3748_v19 }
 0x1b3   :  { %2802 = vrot.lane.b32.xlu1 %v1345_v57, %s3703_s18 }
 0x1b4   :  { %v4475_v39 = vpop.permute.xlu0 %2574  ;;  %v1378_v22 = vrot.slane %v1364_v43, %v3748_v19 }
 0x1b5   :  { %5398 = vst [vmem:[#allocation69_spill] sm:$0xff] %v4475_v39  ;;  %v4479_v62 = vpop.permute.xlu1 %2578  ;;  %v1344_v39 = vrot.slane %v1330_v4, %v3762_v33 }
 0x1b6   :  { %5399 = vst [vmem:[#allocation70_spill] sm:$0xff] %v4479_v62  ;;  %2806 = vrot.lane.b32.xlu0 %v1328_v31, %s3704_s19  ;;  %v1347_v62 = vcombine.high %v1337_v51, %v3694_v29  ;;  %v1380_v31 = vcombine.high %v1356_v48, %v1371_v17  ;;  %v1395_v4 = vcombine.low %v1363_v5, %v1378_v22 }
 0x1b7   :  { %2810 = vrot.lane.b32.xlu1 %v1346_v54, %s3705_s20  ;;  %v1348_v6 = vcombine.high %v1344_v39, %v3694_v29  ;;  %v1396_v17 = vcombine.high %v1363_v5, %v1378_v22  ;;  %v1415_v5 = vcombine.high %v3897_v15, %v3694_v29 }
 0x1b8   :  { %v4487_v20 = vpop.permute.xlu0 %2582  ;;  %v1394_v3 = vrot.slane %v1380_v31, %v3762_v33 }
 0x1b9   :  { %5400 = vst [vmem:[#allocation71_spill] sm:$0xff] %v4487_v20  ;;  %v4491_v57 = vpop.permute.xlu1 %2586 }
 0x1ba   :  { %5401 = vst [vmem:[#allocation72_spill] sm:$0xff] %v4491_v57  ;;  %2814 = vrot.lane.b32.xlu0 %v1337_v51, %s3706_s21  ;;  %v1387_v57 = vrot.slane %v1379_v59, %v3762_v33  ;;  %v1422_v59 = vrot.slane %v3897_v15, %v3748_v19 }
 0x1bb   :  { %2818 = vrot.lane.b32.xlu1 %v1347_v62, %s3707_s22 }
 0x1bc   :  { %v4498_v54 = vpop.permute.xlu0 %2590  ;;  %v1411_v43 = vcombine.high %v1387_v57, %v3694_v29 }
 0x1bd   :  { %v4501_v20 = vpop.permute.xlu1 %2594 }
 0x1be   :  { %2822 = vrot.lane.b32.xlu0 %v1344_v39, %s5314_s23  ;;  %v1437_v39 = vrot.slane %v3895_v12, %v3748_v19 }
 0x1bf   :  { %2826 = vrot.lane.b32.xlu1 %v1348_v6, %s5306_s24  ;;  %s5406_s24 = smov 72  }
 0x1c0   :  { %v4507_v51 = vpop.permute.xlu0 %2598  ;;  %v1445_v31 = vcombine.low %v1422_v59, %v1437_v39 }
 0x1c1   :  { %5402 = vst [vmem:[#allocation73_spill] sm:$0xff] %v4507_v51  ;;  %v4509_v62 = vpop.permute.xlu1 %2602  ;;  %v1403_v51 = vrot.slane %v1395_v4, %v3762_v33 }
 0x1c2   :  { %5403 = vst [vmem:[#allocation74_spill] sm:$0xff] %v4509_v62  ;;  %2830 = vrot.lane.b32.xlu0 %v1387_v57, %s3710_s25  ;;  %v1412_v62 = vcombine.high %v1394_v3, %v3694_v29  ;;  %v1430_v57 = vcombine.high %v3895_v12, %v3694_v29 }
 0x1c3   :  { %2834 = vrot.lane.b32.xlu1 %v1411_v43, %s3711_s26 }
 0x1c4   :  { %v4515_v48 = vpop.permute.xlu0 %2606  ;;  %v1444_v4 = vrot.slane %v1430_v57, %v3748_v19 }
 0x1c5   :  { %5404 = vst [vmem:[#allocation75_spill] sm:$0xff] %v4515_v48  ;;  %v4521_v6 = vpop.permute.xlu1 %2610  ;;  %v1410_v48 = vrot.slane %v1396_v17, %v3762_v33 }
 0x1c6   :  { %5405 = vst [vmem:[#allocation76_spill] sm:$0xff] %v4521_v6  ;;  %2838 = vrot.lane.b32.xlu0 %v1394_v3, %s5406_s24  ;;  %v1413_v6 = vcombine.high %v1403_v51, %v3694_v29  ;;  %v1446_v3 = vcombine.high %v1422_v59, %v1437_v39 }
 0x1c7   :  { %2842 = vrot.lane.b32.xlu1 %v1412_v62, %s3713_s28  ;;  %v1429_v62 = vrot.slane %v1415_v5, %v3748_v19 }
 0x1c8   :  { %v4529_v22 = vpop.permute.xlu0 %2614  ;;  %v1460_v59 = vrot.slane %v1446_v3, %v3762_v33  ;;  %v1496_v3 = vcombine.high %v3907_v13, %v3694_v29 }
 0x1c9   :  { %5407 = vst [vmem:[#allocation77_spill] sm:$0xff] %v4529_v22  ;;  %v4533_v43 = vpop.permute.xlu1 %2618  ;;  %v1453_v22 = vrot.slane %v1445_v31, %v3762_v33 }
 0x1ca   :  { %5408 = vst [vmem:[#allocation78_spill] sm:$0xff] %v4533_v43  ;;  %2846 = vrot.lane.b32.xlu0 %v1403_v51, %s3714_s29  ;;  %v1414_v43 = vcombine.high %v1410_v48, %v3694_v29  ;;  %v3266_v51 = vsel %vm3265_vm0, %v3779_v44, %v4085_v0  ;;  %v1462_v44 = vcombine.high %v1429_v62, %v1444_v4 }
 0x1cb   :  { %2850 = vrot.lane.b32.xlu1 %v1413_v6, %s5389_s27  ;;  %v1461_v6 = vcombine.low %v1429_v62, %v1444_v4  ;;  %v1477_v39 = vcombine.high %v1453_v22, %v3694_v29  ;;  %v3268_v5 = vsel %vm3267_vm1, %v3266_v51, %v4056_v36  ;;  %v1503_v0 = vrot.slane %v3907_v13, %v3748_v19 }
 0x1cc   :  { %v4540_v12 = vpop.permute.xlu0 %2622  ;;  %v3327_v36 = vsel %vm3265_vm0, %v3928_v23, %v4237_v27  ;;  %v1478_v4 = vcombine.high %v1460_v59, %v3694_v29  ;;  %v1481_v51 = vcombine.high %v3912_v38, %v3694_v29  ;;  %v3358_v13 = vsel %vm3265_vm0, %v4079_v46, %v4404_v52 }
 0x1cd   :  { %v4543_v15 = vpop.permute.xlu1 %2626  ;;  %v1469_v62 = vrot.slane %v1461_v6, %v3762_v33  ;;  %v3328_v27 = vsel %vm3267_vm1, %v3327_v36, %v4239_v7  ;;  %v1476_v6 = vrot.slane %v1462_v44, %v3762_v33  ;;  %v1510_v7 = vrot.slane %v1496_v3, %v3748_v19 }
 0x1ce   :  { %2854 = vrot.lane.b32.xlu0 %v1410_v48, %s3716_s2  ;;  %v1488_v48 = vrot.slane %v3912_v38, %v3748_v19  ;;  %v1495_v44 = vrot.slane %v1481_v51, %v3748_v19 }
 0x1cf   :  { %2858 = vrot.lane.b32.xlu1 %v1414_v43, %s3717_s3  ;;  %v3270_v43 = vsel %vm3269_vm2, %v3268_v5, %v4068_v10 }
 0x1d0   :  { %v4552_v17 = vpop.permute.xlu0 %2630  ;;  %v1511_v10 = vcombine.low %v1488_v48, %v1503_v0  ;;  %v3272_v23 = vsel %vm3271_vm3, %v3270_v43, %v4081_v34  ;;  %v3359_v34 = vsel %vm3267_vm1, %v3358_v13, %v4408_v21  ;;  %v1512_v46 = vcombine.high %v1488_v48, %v1503_v0 }
 0x1d1   :  { %v4554_v57 = vpop.permute.xlu1 %2634  ;;  %v1480_v0 = vcombine.high %v1476_v6, %v3694_v29  ;;  %v1527_v51 = vcombine.low %v1495_v44, %v1510_v7  ;;  %v1528_v13 = vcombine.high %v1495_v44, %v1510_v7 }
 0x1d2   :  { %2862 = vrot.lane.b32.xlu0 %v1453_v22, %s5372_s30 }
 0x1d3   :  { %2866 = vrot.lane.b32.xlu1 %v1477_v39, %s3719_s5 }
 0x1d4   :  { %v4566_v31 = vpop.permute.xlu0 %2638 }
 0x1d5   :  { %v4573_v22 = vpop.permute.xlu1 %2642 }
 0x1d6   :  { %2870 = vrot.lane.b32.xlu0 %v1460_v59, %s3720_s6  ;;  %v3329_v59 = vsel %vm3269_vm2, %v3328_v27, %v4250_v60  ;;  %v3274_v60 = vsel %vm3273_vm4, %v3272_v23, %v4088_v56 }
 0x1d7   :  { %2874 = vrot.lane.b32.xlu1 %v1478_v4, %s3721_s7  ;;  %v1479_v4 = vcombine.high %v1469_v62, %v3694_v29  ;;  %v3330_v52 = vsel %vm3271_vm3, %v3329_v59, %v4252_v53  ;;  %v3276_v48 = vsel %vm3275_vm5, %v3274_v60, %v4095_v16  ;;  %v1526_v16 = vrot.slane %v1512_v46, %v3762_v33 }
 0x1d8   :  { %v2647_v39 = vpop.permute.xlu0 %2646  ;;  %v3331_v36 = vsel %vm3273_vm4, %v3330_v52, %v4257_v28  ;;  %v1547_v52 = vcombine.high %v3930_v58, %v3694_v29 }
 0x1d9   :  { %v3389_v38 = vsel %vm3265_vm0, %v4248_v9, %v2647_v39  ;;  %v2651_v5 = vpop.permute.xlu1 %2650  ;;  %v4605_v9 = vrot.slane %v1511_v10, %v3762_v33  ;;  %v3332_v28 = vsel %vm3275_vm5, %v3331_v36, %v4262_v11 }
 0x1da   :  { %2878 = vrot.lane.b32.xlu0 %v1469_v62, %s5353_s4  ;;  %v3390_v21 = vsel %vm3267_vm1, %v3389_v38, %v2651_v5  ;;  %v3360_v62 = vsel %vm3269_vm2, %v3359_v34, %v4417_v42  ;;  %v3333_v27 = vsel %vm5330_vm6, %v3332_v28, %v4270_v47  ;;  %v1569_v38 = vrot.slane %v3919_v49, %v3748_v19 }
 0x1db   :  { %2882 = vrot.lane.b32.xlu1 %v1479_v4, %s3723_s9  ;;  %v3361_v53 = vsel %vm3271_vm3, %v3360_v62, %v4421_v32  ;;  %v1543_v23 = vcombine.high %v4605_v9, %v3694_v29  ;;  %v3278_v32 = vsel %vm5330_vm6, %v3276_v48, %v4101_v40  ;;  %v1554_v40 = vrot.slane %v3930_v58, %v3748_v19 }
 0x1dc   :  { %v2655_v43 = vpop.permute.xlu0 %2654  ;;  %v3362_v39 = vsel %vm3273_vm4, %v3361_v53, %v4424_v2  ;;  %v1535_v47 = vrot.slane %v1527_v51, %v3762_v33  ;;  %v3280_v2 = vsel %vm5325_vm7, %v3278_v32, %v4109_v45  ;;  %v3334_v5 = vsel %vm5325_vm7, %v3333_v27, %v4274_v61  ;;  %v5410_v27 = vld [vmem:[#allocation67_spill] sm:$0xff] }
 0x1dd   :  { %v3391_v56 = vsel %vm3269_vm2, %v3390_v21, %v2655_v43  ;;  %v2659_v3 = vpop.permute.xlu1 %2658  ;;  %v3363_v59 = vsel %vm3275_vm5, %v3362_v39, %v4431_v8  ;;  %v1544_v34 = vcombine.high %v1526_v16, %v3694_v29  ;;  %v3335_v7 = vsel %vm5327_vm8, %v3334_v5, %v4282_v26  ;;  %v5411_v39 = vld [vmem:[#allocation28_spill] sm:$0xff]  ;;  %v5414_v5 = vld [vmem:[#allocation49_spill] sm:$0xff] }
 0x1de   :  { %2886 = vrot.lane.b32.xlu0 %v1476_v6, %s3724_s10  ;;  %v3392_v42 = vsel %vm3271_vm3, %v3391_v56, %v2659_v3  ;;  %v3364_v44 = vsel %vm5330_vm6, %v3363_v59, %v4437_v18  ;;  %v1562_v45 = vcombine.high %v3919_v49, %v3694_v29  ;;  %v1577_v21 = vcombine.low %v1554_v40, %v1569_v38  ;;  %v5412_v59 = vld [vmem:[#allocation29_spill] sm:$0xff] }
 0x1df   :  { %2890 = vrot.lane.b32.xlu1 %v1480_v0, %s5328_s8  ;;  %v3365_v61 = vsel %vm5325_vm7, %v3364_v44, %v4445_v50  ;;  %v3282_v26 = vsel %vm5327_vm8, %v3280_v2, %v4113_v25  ;;  %v1542_v18 = vrot.slane %v1528_v13, %v3762_v33  ;;  %v3336_v43 = vsel %vm5326_vm9, %v3335_v7, %v4286_v14  ;;  %v5413_v13 = vld [vmem:[#allocation48_spill] sm:$0xff] }
 0x1e0   :  { %v2663_v10 = vpop.permute.xlu0 %2662  ;;  %v3284_v49 = vsel %vm5326_vm9, %v3282_v26, %v4120_v37  ;;  %v1545_v62 = vcombine.high %v1535_v47, %v3694_v29  ;;  %v3337_v58 = vsel %vm5308_vm10, %v3336_v43, %v4292_v35  ;;  %v3366_v25 = vsel %vm5327_vm8, %v3365_v61, %v4449_v63 }
 0x1e1   :  { %v3393_v6 = vsel %vm3273_vm4, %v3392_v42, %v2663_v10  ;;  %v2667_v11 = vpop.permute.xlu1 %2666  ;;  %v4678_v37 = vrot.slane %v1562_v45, %v3748_v19  ;;  %v3367_v14 = vsel %vm5326_vm9, %v3366_v25, %v4456_v41  ;;  %v1561_v0 = vrot.slane %v1547_v52, %v3748_v19  ;;  %v5409_v10 = vld [vmem:[#allocation47_spill] sm:$0xff]  ;;  %v5417_v45 = vld [vmem:[#allocation69_spill] sm:$0xff] }
 0x1e2   :  { %2894 = vrot.lane.b32.xlu0 %v1543_v23, %s3698_s13  ;;  %v3394_v8 = vsel %vm3275_vm5, %v3393_v6, %v2667_v11  ;;  %v1578_v48 = vcombine.high %v1554_v40, %v1569_v38  ;;  %v3286_v35 = vsel %vm5308_vm10, %v3284_v49, %v4123_v1  ;;  %v1585_v63 = vrot.slane %v1577_v21, %v3762_v33  ;;  %v5418_v21 = vld [vmem:[#allocation10_spill] sm:$0xff] }
 0x1e3   :  { %2898 = vrot.lane.b32.xlu1 %v1526_v16, %s3695_s0  ;;  %v3288_v53 = vsel %vm5310_vm11, %v3286_v35, %v4129_v55  ;;  %v3338_v51 = vsel %vm5310_vm11, %v3337_v58, %v4296_v30  ;;  %v1546_v42 = vcombine.high %v1542_v18, %v3694_v29  ;;  %v3368_v1 = vsel %vm5308_vm10, %v3367_v14, %v4459_v24 }
 0x1e4   :  { %v2671_v4 = vpop.permute.xlu0 %2670  ;;  %v3339_v23 = vsel %vm5309_vm12, %v3338_v51, %v5409_v10  ;;  %v3369_v55 = vsel %vm5310_vm11, %v3368_v1, %v5410_v27  ;;  %v1593_v30 = vcombine.low %v1561_v0, %v4678_v37  ;;  %v3290_v6 = vsel %vm5309_vm12, %v3288_v53, %v5411_v39  ;;  %v5424_v51 = vld [vmem:[#allocation71_spill] sm:$0xff]  ;;  %v5425_v10 = vld [vmem:[#allocation32_spill] sm:$0xff] }
 0x1e5   :  { %v3395_v60 = vsel %vm5330_vm6, %v3394_v8, %v2671_v4  ;;  %v2675_v46 = vpop.permute.xlu1 %2674  ;;  %v1592_v11 = vrot.slane %v1578_v48, %v3762_v33  ;;  %v3292_v24 = vsel %vm5312_vm13, %v3290_v6, %v5412_v59  ;;  %v3340_v38 = vsel %vm5312_vm13, %v3339_v23, %v5413_v13  ;;  %v5415_v4 = vld [vmem:[#allocation68_spill] sm:$0xff] }
 0x1e6   :  { %2902 = vrot.lane.b32.xlu0 %v1544_v34, %s3696_s11  ;;  %v3396_v50 = vsel %vm5325_vm7, %v3395_v60, %v2675_v46  ;;  %v1609_v2 = vcombine.high %v1585_v63, %v3694_v29  ;;  %v3341_v8 = vsel %vm5311_vm14, %v3340_v38, %v5414_v5  ;;  %v3370_v34 = vsel %vm5309_vm12, %v3369_v55, %v5415_v4  ;;  %v5416_v60 = vld [vmem:[#allocation8_spill] sm:$0xff]  ;;  %v5430_v4 = vld [vmem:[#allocation34_spill] sm:$0xff] }
 0x1e7   :  { %2906 = vrot.lane.b32.xlu1 %v1535_v47, %s3697_s12  ;;  %v4720_v46 = vrot.slane %v5416_v60, %v3748_v19  ;;  %v3371_v61 = vsel %vm5312_vm13, %v3370_v34, %v5417_v45  ;;  %v1594_v52 = vcombine.high %v1561_v0, %v4678_v37  ;;  %v4728_v26 = vrot.slane %v5418_v21, %v3748_v19  ;;  %v5422_v37 = vld [vmem:[#allocation51_spill] sm:$0xff]  ;;  %v5423_v0 = vld [vmem:[#allocation70_spill] sm:$0xff]  ;;  %v5427_v27 = vld [vmem:[#allocation52_spill] sm:$0xff] }
 0x1e8   :  { %v2679_v36 = vpop.permute.xlu0 %2678  ;;  %v1601_v43 = vrot.slane %v1593_v30, %v3762_v33  ;;  %v3372_v48 = vsel %vm5311_vm14, %v3371_v61, %v5423_v0  ;;  %v1628_v53 = vcombine.high %v5416_v60, %v3694_v29  ;;  %v5432_v45 = vld [vmem:[#allocation54_spill] sm:$0xff] }
 0x1e9   :  { %v3397_v56 = vsel %vm5327_vm8, %v3396_v50, %v2679_v36  ;;  %v2683_v3 = vpop.permute.xlu1 %2682  ;;  %v5420_v50 = vld [vmem:[#allocation31_spill] sm:$0xff]  ;;  %v1608_v1 = vrot.slane %v1594_v52, %v3762_v33 }
 0x1ea   :  { %2910 = vrot.lane.b32.xlu0 %v1545_v62, %s3699_s14  ;;  %v3398_v41 = vsel %vm5326_vm9, %v3397_v56, %v2683_v3  ;;  %v5421_v62 = vld [vmem:[#allocation50_spill] sm:$0xff]  ;;  %v1610_v3 = vcombine.high %v1592_v11, %v3694_v29  ;;  %v1611_v6 = vcombine.high %v1601_v43, %v3694_v29 }
 0x1eb   :  { %2914 = vrot.lane.b32.xlu1 %v1542_v18, %s3700_s15  ;;  %v5419_v18 = vld [vmem:[#allocation30_spill] sm:$0xff]  ;;  %v3342_v58 = vsel %vm5318_vm15, %v3341_v8, %v5421_v62  ;;  %v1644_v8 = vcombine.high %v4728_v26, %v4720_v46 }
 0x1ec   :  { %v2687_v28 = vpop.permute.xlu0 %2686  ;;  %v3294_v49 = vsel %vm5311_vm14, %v3292_v24, %v5419_v18  ;;  %v5429_v24 = vld [vmem:[#allocation72_spill] sm:$0xff] }
 0x1ed   :  { %v3399_v16 = vsel %vm5308_vm10, %v3398_v41, %v2687_v28  ;;  %v2691_v32 = vpop.permute.xlu1 %2690  ;;  %vm5313_vm10 = vcmask 556032   ;;  %v3296_v36 = vsel %vm5318_vm15, %v3294_v49, %v5420_v50  ;;  %v3373_v41 = vsel %vm5318_vm15, %v3372_v48, %v5424_v51  ;;  %v5434_v50 = vld [vmem:[#allocation73_spill] sm:$0xff]  ;;  %v5440_v51 = vld [vmem:[#allocation74_spill] sm:$0xff] }
 0x1ee   :  { %2918 = vrot.lane.b32.xlu0 %v1546_v42, %s3701_s16  ;;  %v3400_v40 = vsel %vm5310_vm11, %v3399_v16, %v2691_v32  ;;  %v3343_v14 = vsel %vm5313_vm10, %v3342_v58, %v5422_v37  ;;  %vm5317_vm11 = vcmask 621568   ;;  %v1613_v28 = vcombine.high %v5418_v21, %v3694_v29  ;;  %v5426_v16 = vld [vmem:[#allocation33_spill] sm:$0xff]  ;;  %v5436_v58 = vld [vmem:[#allocation36_spill] sm:$0xff] }
 0x1ef   :  { %2922 = vrot.lane.b32.xlu1 %v1585_v63, %s3702_s17  ;;  %v1643_v42 = vcombine.low %v4728_v26, %v4720_v46  ;;  %v3298_v23 = vsel %vm5313_vm10, %v3296_v36, %v5425_v10  ;;  %v3374_v13 = vsel %vm5313_vm10, %v3373_v41, %v5429_v24  ;;  %v1612_v21 = vcombine.high %v1608_v1, %v3694_v29  ;;  %v5433_v46 = vld [vmem:[#allocation55_spill] sm:$0xff]  ;;  %v5438_v37 = vld [vmem:[#allocation56_spill] sm:$0xff]  ;;  %v5446_v24 = vld [vmem:[#allocation58_spill] sm:$0xff] }
 0x1f0   :  { %v2695_v47 = vpop.permute.xlu0 %2694  ;;  %v1627_v5 = vrot.slane %v1613_v28, %v3748_v19 }
 0x1f1   :  { %v3401_v7 = vsel %vm5309_vm12, %v3400_v40, %v2695_v47  ;;  %v2699_v44 = vpop.permute.xlu1 %2698  ;;  %vm5316_vm12 = vcmask 588800   ;;  %v4770_v47 = vrot.slane %v1628_v53, %v3748_v19 }
 0x1f2   :  { %2926 = vrot.lane.b32.xlu0 %v1609_v2, %s3703_s18  ;;  %v3402_v25 = vsel %vm5312_vm13, %v3401_v7, %v2699_v44  ;;  %v3300_v32 = vsel %vm5316_vm12, %v3298_v23, %v5426_v16  ;;  %v3344_v55 = vsel %vm5316_vm12, %v3343_v14, %v5427_v27  ;;  %vm5319_vm13 = vcmask 687104   ;;  %v5431_v44 = vld [vmem:[#allocation35_spill] sm:$0xff]  ;;  %v5442_v16 = vld [vmem:[#allocation9_spill] sm:$0xff]  ;;  %v5443_v27 = vld [vmem:[#allocation12_spill] sm:$0xff] }
 0x1f3   :  { %2930 = vrot.lane.b32.xlu1 %v1592_v11, %s3704_s19  ;;  %v5428_v11 = vld [vmem:[#allocation53_spill] sm:$0xff]  ;;  %v3375_v2 = vsel %vm5316_vm12, %v3374_v13, %v4498_v54  ;;  %v3302_v34 = vsel %vm5317_vm11, %v3300_v32, %v5430_v4  ;;  %v1651_v7 = vrot.slane %v1643_v42, %v3762_v33  ;;  %v1659_v62 = vcombine.low %v1627_v5, %v4770_v47  ;;  %v5441_v23 = vld [vmem:[#allocation75_spill] sm:$0xff] }
 0x1f4   :  { %v2703_v56 = vpop.permute.xlu0 %2702  ;;  %v3345_v59 = vsel %vm5317_vm11, %v3344_v55, %v5428_v11  ;;  %v3376_v18 = vsel %vm5317_vm11, %v3375_v2, %v4501_v20  ;;  %v1660_v10 = vcombine.high %v1627_v5, %v4770_v47  ;;  %v1701_v32 = vrot.slane %v5442_v16, %v3748_v19  ;;  %v5445_v11 = vld [vmem:[#allocation39_spill] sm:$0xff] }
 0x1f5   :  { %v3403_v35 = vsel %vm5311_vm14, %v3402_v25, %v2703_v56  ;;  %v2707_v63 = vpop.permute.xlu1 %2706  ;;  %vm5320_vm14 = vcmask 654336   ;;  %v1675_v56 = vcombine.high %v1651_v7, %v3694_v29  ;;  %v1686_v55 = vrot.slane %v5443_v27, %v3748_v19  ;;  %v5447_v2 = vld [vmem:[#allocation59_spill] sm:$0xff] }
 0x1f6   :  { %2934 = vrot.lane.b32.xlu0 %v1610_v3, %s3705_s20  ;;  %v3404_v30 = vsel %vm5318_vm15, %v3403_v35, %v2707_v63  ;;  %v3304_v60 = vsel %vm5320_vm14, %v3302_v34, %v5431_v44  ;;  %v3346_v54 = vsel %vm5320_vm14, %v3345_v59, %v5432_v45  ;;  %v3377_v36 = vsel %vm5320_vm14, %v3376_v18, %v5434_v50  ;;  %v5437_v3 = vld [vmem:[#allocation37_spill] sm:$0xff] }
 0x1f7   :  { %2938 = vrot.lane.b32.xlu1 %v1601_v43, %s3706_s21  ;;  %v3347_v26 = vsel %vm5319_vm13, %v3346_v54, %v5433_v46  ;;  %v3306_v25 = vsel %vm5319_vm13, %v3304_v60, %v5436_v58  ;;  %v1658_v35 = vrot.slane %v1644_v8, %v3762_v33  ;;  %v5439_v63 = vld [vmem:[#allocation57_spill] sm:$0xff]  ;;  %v3378_v41 = vsel %vm5319_vm13, %v3377_v36, %v5440_v51  ;;  %v5448_v8 = vld [vmem:[#allocation76_spill] sm:$0xff] }
 0x1f8   :  { %v2711_v39 = vpop.permute.xlu0 %2710  ;;  %vm5323_vm15 = vcmask 818176   ;;  %v1694_v44 = vcombine.high %v5442_v16, %v3694_v29  ;;  %v5449_v60 = vld [vmem:[#allocation77_spill] sm:$0xff]  ;;  %v1679_v54 = vcombine.high %v5443_v27, %v3694_v29  ;;  %v1674_v46 = vrot.slane %v1660_v10, %v3762_v33  ;;  %v5458_v16 = vld [vmem:[#allocation63_spill] sm:$0xff] }
 0x1f9   :  { %v3405_v38 = vsel %vm5313_vm10, %v3404_v30, %v2711_v39  ;;  %v2715_v40 = vpop.permute.xlu1 %2714  ;;  %vm5322_vm10 = vcmask 719872   ;;  %v5444_v30 = vld [vmem:[#allocation38_spill] sm:$0xff]  ;;  %v1676_v47 = vcombine.high %v1658_v35, %v3694_v29  ;;  %v5453_v58 = vld [vmem:[#allocation61_spill] sm:$0xff] }
 0x1fa   :  { %2942 = vrot.lane.b32.xlu0 %v1611_v6, %s3707_s22  ;;  %v3406_v61 = vsel %vm5316_vm12, %v3405_v38, %v2715_v40  ;;  %vm5321_vm12 = vcmask 752640   ;;  %v3308_v20 = vsel %vm5322_vm10, %v3306_v25, %v5437_v3  ;;  %v3348_v14 = vsel %vm5322_vm10, %v3347_v26, %v5438_v37  ;;  %v5451_v26 = vld [vmem:[#allocation41_spill] sm:$0xff] }
 0x1fb   :  { %2946 = vrot.lane.b32.xlu1 %v1608_v1, %s5314_s23  ;;  %s5435_s23 = smov 60   ;;  %v3349_v53 = vsel %vm5321_vm12, %v3348_v14, %v5439_v63  ;;  %v3379_v1 = vsel %vm5322_vm10, %v3378_v41, %v5441_v23  ;;  %v3310_v39 = vsel %vm5321_vm12, %v3308_v20, %v5444_v30  ;;  %v1667_v6 = vrot.slane %v1659_v62, %v3762_v33  ;;  %v5455_v63 = vld [vmem:[#allocation42_spill] sm:$0xff]  ;;  %v5456_v41 = vld [vmem:[#allocation43_spill] sm:$0xff] }
 0x1fc   :  { %v2719_v52 = vpop.permute.xlu0 %2718  ;;  %v3380_v4 = vsel %vm5321_vm12, %v3379_v1, %v5448_v8  ;;  %v1708_v14 = vrot.slane %v1694_v44, %v3748_v19  ;;  %v1678_v1 = vcombine.high %v1674_v46, %v3694_v29 }
 0x1fd   :  { %v3407_v49 = vsel %vm5317_vm11, %v3406_v61, %v2719_v52  ;;  %v2723_v43 = vpop.permute.xlu1 %2722  ;;  %vm5324_vm11 = vcmask 785408   ;;  %v1709_v61 = vcombine.low %v1686_v55, %v1701_v32  ;;  %v5450_v52 = vld [vmem:[#allocation40_spill] sm:$0xff]  ;;  %v1677_v62 = vcombine.high %v1667_v6, %v3694_v29 }
 0x1fe   :  { %2950 = vrot.lane.b32.xlu0 %v1612_v21, %s5435_s23  ;;  %v3408_v0 = vsel %vm5320_vm14, %v3407_v49, %v2723_v43  ;;  %v3312_v59 = vsel %vm5324_vm11, %v3310_v39, %v5445_v11  ;;  %v3350_v13 = vsel %vm5324_vm11, %v3349_v53, %v5446_v24  ;;  %vm3317_vm14 = vcmask 883712   ;;  %v5452_v49 = vld [vmem:[#allocation60_spill] sm:$0xff]  ;;  %v5459_v11 = vld [vmem:[#allocation11_spill] sm:$0xff] }
 0x1ff   :  { %2954 = vrot.lane.b32.xlu1 %v1651_v7, %s3710_s25  ;;  %v3351_v5 = vsel %vm5323_vm15, %v3350_v13, %v5447_v2  ;;  %v3381_v45 = vsel %vm5324_vm11, %v3380_v4, %v5449_v60  ;;  %v3314_v21 = vsel %vm5323_vm15, %v3312_v59, %v5450_v52  ;;  %v1717_v51 = vrot.slane %v1709_v61, %v3762_v33  ;;  %v5460_v24 = vld [vmem:[#allocation44_spill] sm:$0xff]  ;;  %v5463_v4 = vld [vmem:[#allocation15_spill] sm:$0xff] }
 0x200   :  { %v2727_v48 = vpop.permute.xlu0 %2726  ;;  %v1767_v59 = vrot.slane %v5459_v11, %v3748_v19 }
 0x201   :  { %v3409_v28 = vsel %vm5319_vm13, %v3408_v0, %v2727_v48  ;;  %v2731_v42 = vpop.permute.xlu1 %2730  ;;  %vm3315_vm13 = vcmask 850944   ;;  %v1693_v48 = vrot.slane %v1679_v54, %v3748_v19  ;;  %v1741_v8 = vcombine.high %v1717_v51, %v3694_v29 }
 0x202   :  { %2958 = vrot.lane.b32.xlu0 %v1675_v56, %s3711_s26  ;;  %v3410_v38 = vsel %vm5322_vm10, %v3409_v28, %v2731_v42  ;;  %v3316_v18 = vsel %vm3315_vm13, %v3314_v21, %v5451_v26  ;;  %v3352_v43 = vsel %vm3315_vm13, %v3351_v5, %v5452_v49  ;;  %v5454_v56 = vld [vmem:[#allocation78_spill] sm:$0xff]  ;;  %vm5333_vm10 = vcmask 949248  }
 0x203   :  { %2962 = vrot.lane.b32.xlu1 %v1658_v35, %s5406_s24  ;;  %v3353_v25 = vsel %vm3317_vm14, %v3352_v43, %v5453_v58  ;;  %v3382_v3 = vsel %vm5323_vm15, %v3381_v45, %v5454_v56  ;;  %v1710_v35 = vcombine.high %v1686_v55, %v1701_v32  ;;  %v3318_v53 = vsel %vm3317_vm14, %v3316_v18, %v5455_v63  ;;  %v5457_v42 = vld [vmem:[#allocation62_spill] sm:$0xff] }
 0x204   :  { %v2735_v40 = vpop.permute.xlu0 %2734  ;;  %v3383_v0 = vsel %vm3315_vm13, %v3382_v3, %v4540_v12  ;;  %v1726_v52 = vcombine.high %v1693_v48, %v1708_v14  ;;  %v1760_v21 = vcombine.high %v5459_v11, %v3694_v29 }
 0x205   :  { %v3411_v34 = vsel %vm5321_vm12, %v3410_v38, %v2735_v40  ;;  %v2739_v7 = vpop.permute.xlu1 %2738  ;;  %vm3319_vm12 = vcmask 916480   ;;  %v3384_v27 = vsel %vm3317_vm14, %v3383_v0, %v4543_v15  ;;  %v1724_v15 = vrot.slane %v1710_v35, %v3762_v33  ;;  %v5461_v38 = vld [vmem:[#allocation45_spill] sm:$0xff]  ;;  %v5466_v0 = vld [vmem:[#allocation66_spill] sm:$0xff] }
 0x206   :  { %2966 = vrot.lane.b32.xlu0 %v1676_v47, %s3713_s28  ;;  %v3412_v50 = vsel %vm5324_vm11, %v3411_v34, %v2739_v7  ;;  %v3320_v28 = vsel %vm3319_vm12, %v3318_v53, %v5456_v41  ;;  %v3354_v10 = vsel %vm3319_vm12, %v3353_v25, %v5457_v42  ;;  %vm5331_vm11 = vcmask 1014784   ;;  %v5462_v47 = vld [vmem:[#allocation64_spill] sm:$0xff]  ;;  %v5464_v7 = vld [vmem:[#allocation65_spill] sm:$0xff] }
 0x207   :  { %2970 = vrot.lane.b32.xlu1 %v1667_v6, %s3714_s29  ;;  %v3355_v32 = vsel %vm5333_vm10, %v3354_v10, %v5458_v16  ;;  %v3385_v39 = vsel %vm3319_vm12, %v3384_v27, %v4552_v17  ;;  %v1725_v6 = vcombine.low %v1693_v48, %v1708_v14  ;;  %v3322_v13 = vsel %vm5333_vm10, %v3320_v28, %v5460_v24  ;;  %v5468_v24 = vld [vmem:[#allocation17_spill] sm:$0xff] }
 0x208   :  { %v2743_v36 = vpop.permute.xlu0 %2742  ;;  %v1752_v34 = vrot.slane %v5463_v4, %v3748_v19  ;;  %v3386_v60 = vsel %vm5333_vm10, %v3385_v39, %v4554_v57  ;;  %v1742_v43 = vcombine.high %v1724_v15, %v3694_v29  ;;  %v1774_v3 = vrot.slane %v1760_v21, %v3748_v19  ;;  %v5467_v39 = vld [vmem:[#allocation13_spill] sm:$0xff] }
 0x209   :  { %v3413_v20 = vsel %vm5323_vm15, %v3412_v50, %v2743_v36  ;;  %v2747_v37 = vpop.permute.xlu1 %2746  ;;  %vm5332_vm15 = vcmask 982016   ;;  %v1733_v50 = vrot.slane %v1725_v6, %v3762_v33  ;;  %v1833_v6 = vrot.slane %v5467_v39, %v3748_v19 }
 0x20a   :  { %2974 = vrot.lane.b32.xlu0 %v1677_v62, %s5389_s27  ;;  %v3414_v12 = vsel %vm3315_vm13, %v3413_v20, %v2747_v37  ;;  %v3324_v40 = vsel %vm5332_vm15, %v3322_v13, %v5461_v38  ;;  %v3356_v2 = vsel %vm5332_vm15, %v3355_v32, %v5462_v47  ;;  %v3387_v61 = vsel %vm5332_vm15, %v3386_v60, %v4566_v31 }
 0x20b   :  { %2978 = vrot.lane.b32.xlu1 %v1674_v46, %s3716_s2  ;;  %v3357_v44 = vsel %vm5331_vm11, %v3356_v2, %v5464_v7  ;;  %v5465_v46 = vld [vmem:[#allocation46_spill] sm:$0xff]  ;;  %v1745_v31 = vcombine.high %v5463_v4, %v3694_v29  ;;  %v1775_v36 = vcombine.low %v1752_v34, %v1767_v59  ;;  %v3388_v62 = vsel %vm5331_vm11, %v3387_v61, %v4573_v22 }
 0x20c   :  { %v2751_v23 = vpop.permute.xlu0 %2750  ;;  %v3326_v26 = vsel %vm5331_vm11, %v3324_v40, %v5465_v46  ;;  %v1740_v20 = vrot.slane %v1726_v52, %v3762_v33  ;;  %v1743_v35 = vcombine.high %v1733_v50, %v3694_v29  ;;  %v1776_v53 = vcombine.high %v1752_v34, %v1767_v59 }
 0x20d   :  { %v3415_v55 = vsel %vm3317_vm14, %v3414_v12, %v2751_v23  ;;  %v2755_v30 = vpop.permute.xlu1 %2754  ;;  %v3552_v18 = vcombine.low %v3326_v26, %v3357_v44  ;;  %v1759_v63 = vrot.slane %v1745_v31, %v3748_v19  ;;  %v1818_v13 = vrot.slane %v5468_v24, %v3748_v19 }
 0x20e   :  { %2982 = vrot.lane.b32.xlu0 %v1678_v1, %s3717_s3  ;;  %v3416_v17 = vsel %vm3319_vm12, %v3415_v55, %v2755_v30  ;;  %v1744_v23 = vcombine.high %v1740_v20, %v3694_v29  ;;  %v1790_v55 = vrot.slane %v1776_v53, %v3762_v33  ;;  %v1826_v2 = vcombine.high %v5467_v39, %v3694_v29 }
 0x20f   :  { %2986 = vrot.lane.b32.xlu1 %v1717_v51, %s5372_s30  ;;  %v3560_v37 = vrot.slane %v3552_v18, %v3748_v19  ;;  %v4926_v51 = vrot.slane %v1775_v36, %v3762_v33  ;;  %v1791_v1 = vcombine.low %v1759_v63, %v1774_v3  ;;  %v1792_v30 = vcombine.high %v1759_v63, %v1774_v3 }
 0x210   :  { %v2759_v5 = vpop.permute.xlu0 %2758  ;;  %v1808_v40 = vcombine.high %v1790_v55, %v3694_v29  ;;  %v1841_v4 = vcombine.low %v1818_v13, %v1833_v6  ;;  %v1842_v21 = vcombine.high %v1818_v13, %v1833_v6 }
 0x211   :  { %v3417_v45 = vsel %vm5333_vm10, %v3416_v17, %v2759_v5  ;;  %v2763_v54 = vpop.permute.xlu1 %2762  ;;  %v1807_v27 = vcombine.high %v4926_v51, %v3694_v29  ;;  %v1799_v47 = vrot.slane %v1791_v1, %v3762_v33  ;;  %v1811_v17 = vcombine.high %v5468_v24, %v3694_v29 }
 0x212   :  { %2990 = vrot.lane.b32.xlu0 %v1741_v8, %s3719_s5  ;;  %v3418_v57 = vsel %vm5332_vm15, %v3417_v45, %v2763_v54  ;;  %v1806_v60 = vrot.slane %v1792_v30, %v3762_v33  ;;  %v1840_v45 = vrot.slane %v1826_v2, %v3748_v19 }
 0x213   :  { %2994 = vrot.lane.b32.xlu1 %v1724_v15, %s3720_s6  ;;  %v1809_v44 = vcombine.high %v1799_v47, %v3694_v29  ;;  %v1825_v54 = vrot.slane %v1811_v17, %v3748_v19 }
 0x214   :  { %v2767_v49 = vpop.permute.xlu0 %2766  ;;  %v1810_v18 = vcombine.high %v1806_v60, %v3694_v29 }
 0x215   :  { %v3419_v58 = vsel %vm5331_vm11, %v3418_v57, %v2767_v49  ;;  %v2771_v25 = vpop.permute.xlu1 %2770  ;;  %v1849_v57 = vrot.slane %v1841_v4, %v3762_v33  ;;  %v1857_v49 = vcombine.low %v1825_v54, %v1840_v45 }
 0x216   :  { %v3553_v56 = vcombine.low %v3388_v62, %v3419_v58  ;;  %2998 = vrot.lane.b32.xlu0 %v1742_v43, %s3721_s7  ;;  %v3420_v48 = vsel %vm3265_vm0, %v5466_v0, %v2771_v25  ;;  %v5469_v43 = vld [vmem:[#allocation18_spill] sm:$0xff]  ;;  %v5471_v62 = vld [vmem:[#allocation23_spill] sm:$0xff] }
 0x217   :  { %3002 = vrot.lane.b32.xlu1 %v1733_v50, %s5353_s4  ;;  %v2031_v50 = vrot.slane %v5469_v43, %v3748_v19  ;;  %v2016_v58 = vrot.slane %v5471_v62, %v3748_v19  ;;  %v1873_v3 = vcombine.high %v1849_v57, %v3694_v29 }
 0x218   :  { %v3567_v14 = vrot.slane %v3553_v56, %v3748_v19  ;;  %v2775_v22 = vpop.permute.xlu0 %2774 }
 0x219   :  { %v3421_v41 = vsel %vm3267_vm1, %v3420_v48, %v2775_v22  ;;  %v2779_v28 = vpop.permute.xlu1 %2778  ;;  %v2039_v22 = vcombine.low %v2016_v58, %v2031_v50  ;;  %v2040_v1 = vcombine.high %v2016_v58, %v2031_v50 }
 0x21a   :  { %3006 = vrot.lane.b32.xlu0 %v1743_v35, %s3723_s9  ;;  %v3568_v42 = vcombine.low %v3560_v37, %v3567_v14  ;;  %v3422_v10 = vsel %vm3269_vm2, %v3421_v41, %v2779_v28  ;;  %v2024_v37 = vcombine.high %v5469_v43, %v3694_v29  ;;  %v2009_v14 = vcombine.high %v5471_v62, %v3694_v29 }
 0x21b   :  { %3010 = vrot.lane.b32.xlu1 %v1740_v20, %s3724_s10  ;;  %v1856_v20 = vrot.slane %v1842_v21, %v3762_v33  ;;  %v1865_v41 = vrot.slane %v1857_v49, %v3762_v33  ;;  %v1858_v28 = vcombine.high %v1825_v54, %v1840_v45 }
 0x21c   :  { %v2783_v12 = vpop.permute.xlu0 %2782  ;;  %3588 = vst [vmem:[#allocation5] sm:$0xff] %v3568_v42  ;;  %v2038_v42 = vrot.slane %v2024_v37, %v3748_v19 }
 0x21d   :  { %v3423_v16 = vsel %vm3271_vm3, %v3422_v10, %v2783_v12  ;;  %v2787_v32 = vpop.permute.xlu1 %2786  ;;  %v1874_v53 = vcombine.high %v1856_v20, %v3694_v29  ;;  %v2023_v10 = vrot.slane %v2009_v14, %v3748_v19  ;;  %v4999_v6 = vrot.slane %v1858_v28, %v3762_v33 }
 0x21e   :  { %3014 = vrot.lane.b32.xlu0 %v1744_v23, %s5328_s8  ;;  %v3424_v11 = vsel %vm3273_vm4, %v3423_v16, %v2787_v32  ;;  %v4991_v16 = vrot.slane %v2039_v22, %v3762_v33  ;;  %s5479_s8 = smov 56  }
 0x21f   :  { %3018 = vrot.lane.b32.xlu1 %v1807_v27, %s3698_s13 }
 0x220   :  { %v2791_v59 = vpop.permute.xlu0 %2790  ;;  %v2071_v13 = vcombine.high %v4991_v16, %v3694_v29 }
 0x221   :  { %v3425_v15 = vsel %vm3275_vm5, %v3424_v11, %v2791_v59  ;;  %v2795_v38 = vpop.permute.xlu1 %2794  ;;  %v2055_v11 = vcombine.low %v2023_v10, %v2038_v42 }
 0x222   :  { %3022 = vrot.lane.b32.xlu0 %v1790_v55, %s3695_s0  ;;  %v3426_v5 = vsel %vm5330_vm6, %v3425_v15, %v2795_v38  ;;  %v1875_v55 = vcombine.high %v1865_v41, %v3694_v29  ;;  %v2054_v15 = vrot.slane %v2040_v1, %v3762_v33  ;;  %v2056_v38 = vcombine.high %v2023_v10, %v2038_v42 }
 0x223   :  { %3026 = vrot.lane.b32.xlu1 %v1808_v40, %s3696_s11  ;;  %v5480_v40 = vld [vmem:[#allocation20_spill] sm:$0xff] }
 0x224   :  { %v2799_v8 = vpop.permute.xlu0 %2798 }
 0x225   :  { %v3427_v34 = vsel %vm5325_vm7, %v3426_v5, %v2799_v8  ;;  %v2803_v7 = vpop.permute.xlu1 %2802  ;;  %vm5470_vm7 = vcmask 359424   ;;  %v5482_v5 = vld [vmem:[#allocation25_spill] sm:$0xff] }
 0x226   :  { %3030 = vrot.lane.b32.xlu0 %v1799_v47, %s3697_s12  ;;  %v3428_v61 = vsel %vm5327_vm8, %v3427_v34, %v2803_v7  ;;  %vm5475_vm8 = vcmask 490496   ;;  %v2097_v47 = vrot.slane %v5480_v40, %v3748_v19  ;;  %v2082_v8 = vrot.slane %v5482_v5, %v3748_v19 }
 0x227   :  { %3034 = vrot.lane.b32.xlu1 %v1809_v44, %s3699_s14  ;;  %v2072_v7 = vcombine.high %v2054_v15, %v3694_v29  ;;  %v2063_v44 = vrot.slane %v2055_v11, %v3762_v33  ;;  %v2075_v45 = vcombine.high %v5482_v5, %v3694_v29  ;;  %v1876_v5 = vcombine.high %v4999_v6, %v3694_v29 }
 0x228   :  { %v2807_v52 = vpop.permute.xlu0 %2806 }
 0x229   :  { %v3429_v46 = vsel %vm5326_vm9, %v3428_v61, %v2807_v52  ;;  %v2811_v26 = vpop.permute.xlu1 %2810  ;;  %vm5472_vm9 = vcmask 392192   ;;  %v2105_v52 = vcombine.low %v2082_v8, %v2097_v47  ;;  %v2089_v49 = vrot.slane %v2075_v45, %v3748_v19 }
 0x22a   :  { %3038 = vrot.lane.b32.xlu0 %v1806_v60, %s3700_s15  ;;  %v3430_v31 = vsel %vm5470_vm7, %v3429_v46, %v2811_v26  ;;  %vm5473_vm7 = vcmask 424960   ;;  %v2090_v60 = vcombine.high %v5480_v40, %v3694_v29  ;;  %v2073_v26 = vcombine.high %v2063_v44, %v3694_v29 }
 0x22b   :  { %3042 = vrot.lane.b32.xlu1 %v1810_v18, %s3701_s16  ;;  %v2070_v18 = vrot.slane %v2056_v38, %v3762_v33 }
 0x22c   :  { %v2815_v36 = vpop.permute.xlu0 %2814 }
 0x22d   :  { %v3431_v25 = vsel %vm5472_vm9, %v3430_v31, %v2815_v36  ;;  %v2819_v56 = vpop.permute.xlu1 %2818  ;;  %vm5474_vm9 = vcmask 457728   ;;  %v2106_v31 = vcombine.high %v2082_v8, %v2097_v47  ;;  %v2074_v58 = vcombine.high %v2070_v18, %v3694_v29 }
 0x22e   :  { %3046 = vrot.lane.b32.xlu0 %v1849_v57, %s3702_s17  ;;  %v3432_v0 = vsel %vm5473_vm7, %v3431_v25, %v2819_v56  ;;  %vm5476_vm7 = vcmask 523264   ;;  %v2104_v57 = vrot.slane %v2090_v60, %v3748_v19  ;;  %v2113_v25 = vrot.slane %v2105_v52, %v3762_v33 }
 0x22f   :  { %3050 = vrot.lane.b32.xlu1 %v1873_v3, %s3703_s18 }
 0x230   :  { %v2823_v48 = vpop.permute.xlu0 %2822  ;;  %v2122_v10 = vcombine.high %v2089_v49, %v2104_v57 }
 0x231   :  { %v3433_v35 = vsel %vm5474_vm9, %v3432_v0, %v2823_v48  ;;  %v2827_v63 = vpop.permute.xlu1 %2826  ;;  %vm5477_vm9 = vcmask 556032   ;;  %v2137_v0 = vcombine.high %v2113_v25, %v3694_v29  ;;  %v2120_v48 = vrot.slane %v2106_v31, %v3762_v33 }
 0x232   :  { %3054 = vrot.lane.b32.xlu0 %v1856_v20, %s3704_s19  ;;  %v3434_v12 = vsel %vm5475_vm8, %v3433_v35, %v2827_v63  ;;  %vm5478_vm8 = vcmask 588800   ;;  %v2121_v20 = vcombine.low %v2089_v49, %v2104_v57  ;;  %v2136_v40 = vrot.slane %v2122_v10, %v3762_v33 }
 0x233   :  { %3058 = vrot.lane.b32.xlu1 %v1874_v53, %s3705_s20 }
 0x234   :  { %v2831_v23 = vpop.permute.xlu0 %2830  ;;  %v2129_v28 = vrot.slane %v2121_v20, %v3762_v33 }
 0x235   :  { %v3435_v32 = vsel %vm5476_vm7, %v3434_v12, %v2831_v23  ;;  %v2835_v27 = vpop.permute.xlu1 %2834  ;;  %vm5481_vm7 = vcmask 621568   ;;  %v5489_v23 = vld [vmem:[#allocation14_spill] sm:$0xff] }
 0x236   :  { %3062 = vrot.lane.b32.xlu0 %v1865_v41, %s3706_s21  ;;  %v3436_v30 = vsel %vm5477_vm9, %v3435_v32, %v2835_v27  ;;  %vm5483_vm9 = vcmask 654336   ;;  %v2138_v41 = vcombine.high %v2120_v48, %v3694_v29  ;;  %v1899_v1 = vrot.slane %v5489_v23, %v3748_v19  ;;  %v5490_v32 = vld [vmem:[#allocation19_spill] sm:$0xff] }
 0x237   :  { %3066 = vrot.lane.b32.xlu1 %v1875_v55, %s3707_s22  ;;  %v1884_v27 = vrot.slane %v5490_v32, %v3748_v19  ;;  %v1877_v52 = vcombine.high %v5490_v32, %v3694_v29 }
 0x238   :  { %v2839_v39 = vpop.permute.xlu0 %2838 }
 0x239   :  { %v3437_v59 = vsel %vm5478_vm8, %v3436_v30, %v2839_v39  ;;  %v2843_v24 = vpop.permute.xlu1 %2842  ;;  %vm5484_vm8 = vcmask 687104   ;;  %v2139_v39 = vcombine.high %v2129_v28, %v3694_v29  ;;  %v1907_v47 = vcombine.low %v1884_v27, %v1899_v1 }
 0x23a   :  { %3070 = vrot.lane.b32.xlu0 %v4999_v6, %s5479_s8  ;;  %v3438_v2 = vsel %vm5481_vm7, %v3437_v59, %v2843_v24  ;;  %vm5485_vm7 = vcmask 719872   ;;  %v5491_v59 = vld [vmem:[#allocation22_spill] sm:$0xff]  ;;  %v1892_v6 = vcombine.high %v5489_v23, %v3694_v29 }
 0x23b   :  { %3142 = vrot.lane.b32.xlu1 %v2071_v13, %s3698_s13  ;;  %v2163_v24 = vrot.slane %v5491_v59, %v3748_v19  ;;  %v5492_v13 = vld [vmem:[#allocation26_spill] sm:$0xff]  ;;  %v1915_v45 = vrot.slane %v1907_v47, %v3762_v33  ;;  %v2156_v49 = vcombine.high %v5491_v59, %v3694_v29  ;;  %v5500_v47 = vld [vmem:[#allocation16_spill] sm:$0xff] }
 0x23c   :  { %v2847_v17 = vpop.permute.xlu0 %2846 }
 0x23d   :  { %v3439_v4 = vsel %vm5483_vm9, %v3438_v2, %v2847_v17  ;;  %v2851_v34 = vpop.permute.xlu1 %2850  ;;  %vm5486_vm9 = vcmask 752640  }
 0x23e   :  { %3146 = vrot.lane.b32.xlu0 %v2054_v15, %s3695_s0  ;;  %v3440_v54 = vsel %vm5484_vm8, %v3439_v4, %v2851_v34  ;;  %vm5487_vm8 = vcmask 785408   ;;  %v2148_v15 = vrot.slane %v5492_v13, %v3748_v19  ;;  %s5515_s0 = smov 124  }
 0x23f   :  { %3150 = vrot.lane.b32.xlu1 %v2072_v7, %s3696_s11  ;;  %v2140_v7 = vcombine.high %v2136_v40, %v3694_v29  ;;  %s3726_s11 = smov [#allocation5]  }
 0x240   :  { %v2855_v61 = vpop.permute.xlu0 %2854  ;;  %v2171_v4 = vcombine.low %v2148_v15, %v2163_v24 }
 0x241   :  { %v3441_v21 = vsel %vm5485_vm7, %v3440_v54, %v2855_v61  ;;  %v2859_v46 = vpop.permute.xlu1 %2858  ;;  %vm5488_vm7 = vcmask 818176  }
 0x242   :  { %3154 = vrot.lane.b32.xlu0 %v2063_v44, %s3697_s12  ;;  %v3442_v43 = vsel %vm5486_vm9, %v3441_v21, %v2859_v46  ;;  %v2179_v61 = vrot.slane %v2171_v4, %v3762_v33  ;;  %v1908_v21 = vcombine.high %v1884_v27, %v1899_v1  ;;  %vm5493_vm9 = vcmask 261120   ;;  %s3596_s12 = sshll.u32 %s3726_s11, 4  ;;  %s3597_s12 = int_to_ptr.vmem [resolvable:$true] %s3596_s12 }
 0x243   :  { %3158 = vrot.lane.b32.xlu1 %v2073_v26, %s3699_s14  ;;  %s3667_s13 = scalar_lea.vmem %s3597_s12, 256  ;;  %p3672_p6 = scmp.lt.s32.totalorder %s3597_s12, %s3597_s12 }
 0x244   :  { %v2863_v50 = vpop.permute.xlu0 %2862  ;;  %p3668_p5 = scmp.ne.s32.totalorder %s3597_s12, %s3667_s13  ;;  %p3673_p7 = scmp.lt.s32.totalorder %s3667_s13, %s3667_s13 }
 0x245   :  { %v3443_v36 = vsel %vm5487_vm8, %v3442_v43, %v2863_v50  ;;  %v2867_v62 = vpop.permute.xlu1 %2866  ;;  %v2141_v43 = vcombine.high %v5492_v13, %v3694_v29  ;;  %v2172_v50 = vcombine.high %v2148_v15, %v2163_v24  ;;  %vm5494_vm8 = vcmask 293888  }
 0x246   :  { %3162 = vrot.lane.b32.xlu0 %v2070_v18, %s3700_s15  ;;  %v3444_v56 = vsel %vm5488_vm7, %v3443_v36, %v2867_v62  ;;  %v1939_v18 = vcombine.high %v1915_v45, %v3694_v29  ;;  %v2203_v36 = vcombine.high %v2179_v61, %v3694_v29  ;;  %v1906_v62 = vrot.slane %v1892_v6, %v3748_v19  ;;  %p3674_p8 = por %p3673_p7, %p3672_p6 }
 0x247   :  { %3166 = vrot.lane.b32.xlu1 %v2074_v58, %s3701_s16  ;;  %v1891_v58 = vrot.slane %v1877_v52, %v3748_v19  ;;  %vm5495_vm7 = vcmask 326656  }
 0x248   :  { %v2871_v3 = vpop.permute.xlu0 %2870  ;;  %p3675_p9 = pnand %p3674_p8, %p3668_p5 }
 0x249   :  { %v3445_v37 = vsel %vm3315_vm13, %v3444_v56, %v2871_v3  ;;  %v2875_v14 = vpop.permute.xlu1 %2874  ;;  %v1922_v3 = vrot.slane %v1908_v21, %v3762_v33 }
 0x24a   :  { %3170 = vrot.lane.b32.xlu0 %v2113_v25, %s3702_s17  ;;  %v3446_v22 = vsel %vm3317_vm14, %v3445_v37, %v2875_v14  ;;  %v2170_v37 = vrot.slane %v2156_v49, %v3748_v19  ;;  %v2155_v14 = vrot.slane %v2141_v43, %v3748_v19 }
 0x24b   :  { %3174 = vrot.lane.b32.xlu1 %v2137_v0, %s3703_s18 }
 0x24c   :  { %v2879_v35 = vpop.permute.xlu0 %2878  ;;  %v2188_v15 = vcombine.high %v2155_v14, %v2170_v37 }
 0x24d   :  { %v3447_v63 = vsel %vm3319_vm12, %v3446_v22, %v2879_v35  ;;  %v2883_v53 = vpop.permute.xlu1 %2882  ;;  %v1923_v22 = vcombine.low %v1891_v58, %v1906_v62 }
 0x24e   :  { %v3448_v42 = vsel %vm5333_vm10, %v3447_v63, %v2883_v53  ;;  %3178 = vrot.lane.b32.xlu0 %v2120_v48, %s3704_s19  ;;  %v2186_v48 = vrot.slane %v2172_v50, %v3762_v33  ;;  %v1940_v53 = vcombine.high %v1922_v3, %v3694_v29 }
 0x24f   :  { %3182 = vrot.lane.b32.xlu1 %v2138_v41, %s3705_s20  ;;  %v1931_v1 = vrot.slane %v1923_v22, %v3762_v33 }
 0x250   :  { %v2887_v12 = vpop.permute.xlu0 %2886  ;;  %v2204_v10 = vcombine.high %v2186_v48, %v3694_v29 }
 0x251   :  { %v3449_v55 = vsel %vm5332_vm15, %v3448_v42, %v2887_v12  ;;  %v2891_v30 = vpop.permute.xlu1 %2890  ;;  %v1941_v24 = vcombine.high %v1931_v1, %v3694_v29 }
 0x252   :  { %v5056_v11 = vsel %vm5331_vm11, %v3449_v55, %v2891_v30  ;;  %3186 = vrot.lane.b32.xlu0 %v2129_v28, %s3706_s21  ;;  %v2187_v28 = vcombine.low %v2155_v14, %v2170_v37  ;;  %v1924_v30 = vcombine.high %v1891_v58, %v1906_v62  ;;  %v1958_v62 = vcombine.high %v5500_v47, %v3694_v29 }
 0x253   :  { %3190 = vrot.lane.b32.xlu1 %v2139_v39, %s3707_s22 }
 0x254   :  { %v2895_v38 = vpop.permute.xlu0 %2894  ;;  %v2195_v55 = vrot.slane %v2187_v28, %v3762_v33 }
 0x255   :  { %v3451_v2 = vsel %vm3265_vm0, %v4605_v9, %v2895_v38  ;;  %v2899_v17 = vpop.permute.xlu1 %2898 }
 0x256   :  { %v3452_v8 = vsel %vm3267_vm1, %v3451_v2, %v2899_v17  ;;  %3194 = vrot.lane.b32.xlu0 %v2136_v40, %s5479_s8  ;;  %v2205_v40 = vcombine.high %v2195_v55, %v3694_v29  ;;  %v1965_v2 = vrot.slane %v5500_v47, %v3748_v19  ;;  %v5501_v17 = vld [vmem:[#allocation21_spill] sm:$0xff] }
 0x257   :  { %3074 = vrot.lane.b32.xlu1 %v1876_v5, %s5435_s23  ;;  %v1950_v5 = vrot.slane %v5501_v17, %v3748_v19 }
 0x258   :  { %v2903_v34 = vpop.permute.xlu0 %2902 }
 0x259   :  { %v3453_v44 = vsel %vm3269_vm2, %v3452_v8, %v2903_v34  ;;  %v2907_v60 = vpop.permute.xlu1 %2906  ;;  %v1938_v34 = vrot.slane %v1924_v30, %v3762_v33 }
 0x25a   :  { %v3454_v9 = vsel %vm3271_vm3, %v3453_v44, %v2907_v60  ;;  %3198 = vrot.lane.b32.xlu0 %v2140_v7, %s5435_s23  ;;  %v5504_v44 = vld [vmem:[#allocation24_spill] sm:$0xff] }
 0x25b   :  { %3078 = vrot.lane.b32.xlu1 %v1915_v45, %s3710_s25  ;;  %v2229_v60 = vrot.slane %v5504_v44, %v3748_v19  ;;  %v5505_v45 = vld [vmem:[#allocation27_spill] sm:$0xff] }
 0x25c   :  { %v2911_v54 = vpop.permute.xlu0 %2910  ;;  %v2207_v22 = vcombine.high %v5505_v45, %v3694_v29 }
 0x25d   :  { %v3455_v46 = vsel %vm3273_vm4, %v3454_v9, %v2911_v54  ;;  %v2915_v26 = vpop.permute.xlu1 %2914  ;;  %v2214_v9 = vrot.slane %v5505_v45, %v3748_v19  ;;  %v2202_v54 = vrot.slane %v2188_v15, %v3762_v33 }
 0x25e   :  { %v3456_v57 = vsel %vm3275_vm5, %v3455_v46, %v2915_v26  ;;  %3202 = vrot.lane.b32.xlu0 %v2179_v61, %s3710_s25  ;;  %v1973_v61 = vcombine.low %v1950_v5, %v1965_v2  ;;  %v1942_v46 = vcombine.high %v1938_v34, %v3694_v29 }
 0x25f   :  { %3082 = vrot.lane.b32.xlu1 %v1939_v18, %s3711_s26  ;;  %v2237_v18 = vcombine.low %v2214_v9, %v2229_v60  ;;  %v2206_v49 = vcombine.high %v2202_v54, %v3694_v29 }
 0x260   :  { %v2919_v31 = vpop.permute.xlu0 %2918 }
 0x261   :  { %v3457_v25 = vsel %vm5330_vm6, %v3456_v57, %v2919_v31  ;;  %v2923_v56 = vpop.permute.xlu1 %2922  ;;  %vm5497_vm6 = vcmask 392192   ;;  %v1981_v31 = vrot.slane %v1973_v61, %v3762_v33 }
 0x262   :  { %v3458_v20 = vsel %vm5493_vm9, %v3457_v25, %v2923_v56  ;;  %3206 = vrot.lane.b32.xlu0 %v2203_v36, %s3711_s26  ;;  %vm5496_vm9 = vcmask 359424   ;;  %v2245_v25 = vrot.slane %v2237_v18, %v3762_v33  ;;  %v1943_v56 = vcombine.high %v5501_v17, %v3694_v29 }
 0x263   :  { %3086 = vrot.lane.b32.xlu1 %v1922_v3, %s5406_s24  ;;  %v1974_v3 = vcombine.high %v1950_v5, %v1965_v2  ;;  %v2005_v14 = vcombine.high %v1981_v31, %v3694_v29 }
 0x264   :  { %v2927_v0 = vpop.permute.xlu0 %2926  ;;  %v1957_v28 = vrot.slane %v1943_v56, %v3748_v19 }
 0x265   :  { %v3459_v35 = vsel %vm5494_vm8, %v3458_v20, %v2927_v0  ;;  %v2931_v63 = vpop.permute.xlu1 %2930  ;;  %vm5498_vm8 = vcmask 424960  }
 0x266   :  { %v3460_v41 = vsel %vm5495_vm7, %v3459_v35, %v2931_v63  ;;  %3210 = vrot.lane.b32.xlu0 %v2186_v48, %s5406_s24  ;;  %vm5499_vm7 = vcmask 457728   ;;  %v2222_v48 = vcombine.high %v5504_v44, %v3694_v29  ;;  %v2238_v35 = vcombine.high %v2214_v9, %v2229_v60 }
 0x267   :  { %3090 = vrot.lane.b32.xlu1 %v1940_v53, %s3713_s28  ;;  %v2269_v53 = vcombine.high %v2245_v25, %v3694_v29 }
 0x268   :  { %v2935_v42 = vpop.permute.xlu0 %2934 }
 0x269   :  { %v3461_v12 = vsel %vm5496_vm9, %v3460_v41, %v2935_v42  ;;  %v2939_v23 = vpop.permute.xlu1 %2938  ;;  %vm5503_vm9 = vcmask 523264   ;;  %v1972_v41 = vrot.slane %v1958_v62, %v3748_v19 }
 0x26a   :  { %v3462_v32 = vsel %vm5497_vm6, %v3461_v12, %v2939_v23  ;;  %3214 = vrot.lane.b32.xlu0 %v2204_v10, %s3713_s28  ;;  %vm5502_vm6 = vcmask 490496   ;;  %v1988_v12 = vrot.slane %v1974_v3, %v3762_v33 }
 0x26b   :  { %3094 = vrot.lane.b32.xlu1 %v1931_v1, %s3714_s29  ;;  %v2236_v1 = vrot.slane %v2222_v48, %v3748_v19  ;;  %v1989_v30 = vcombine.low %v1957_v28, %v1972_v41 }
 0x26c   :  { %v2943_v27 = vpop.permute.xlu0 %2942 }
 0x26d   :  { %v3463_v39 = vsel %vm5498_vm8, %v3462_v32, %v2943_v27  ;;  %v2947_v59 = vpop.permute.xlu1 %2946  ;;  %vm5506_vm8 = vcmask 556032   ;;  %v2221_v32 = vrot.slane %v2207_v22, %v3748_v19  ;;  %v1997_v17 = vrot.slane %v1989_v30, %v3762_v33 }
 0x26e   :  { %v3464_v13 = vsel %vm5499_vm7, %v3463_v39, %v2947_v59  ;;  %3218 = vrot.lane.b32.xlu0 %v2195_v55, %s3714_s29  ;;  %vm5507_vm7 = vcmask 588800   ;;  %v2252_v55 = vrot.slane %v2238_v35, %v3762_v33 }
 0x26f   :  { %3098 = vrot.lane.b32.xlu1 %v1941_v24, %s5389_s27  ;;  %v2006_v24 = vcombine.high %v1988_v12, %v3694_v29  ;;  %v2253_v15 = vcombine.low %v2221_v32, %v2236_v1  ;;  %v2007_v60 = vcombine.high %v1997_v17, %v3694_v29  ;;  %v2254_v9 = vcombine.high %v2221_v32, %v2236_v1 }
 0x270   :  { %v2951_v38 = vpop.permute.xlu0 %2950 }
 0x271   :  { %v3465_v8 = vsel %vm5502_vm6, %v3464_v13, %v2951_v38  ;;  %v2955_v4 = vpop.permute.xlu1 %2954  ;;  %vm5508_vm6 = vcmask 621568  }
 0x272   :  { %v3466_v7 = vsel %vm5503_vm9, %v3465_v8, %v2955_v4  ;;  %3222 = vrot.lane.b32.xlu0 %v2205_v40, %s5389_s27  ;;  %vm5509_vm9 = vcmask 654336   ;;  %v2270_v40 = vcombine.high %v2252_v55, %v3694_v29  ;;  %v2261_v4 = vrot.slane %v2253_v15, %v3762_v33 }
 0x273   :  { %3102 = vrot.lane.b32.xlu1 %v1938_v34, %s3716_s2  ;;  %v1990_v34 = vcombine.high %v1957_v28, %v1972_v41 }
 0x274   :  { %v2959_v6 = vpop.permute.xlu0 %2958 }
 0x275   :  { %v3467_v52 = vsel %vm5506_vm8, %v3466_v7, %v2959_v6  ;;  %v2963_v21 = vpop.permute.xlu1 %2962  ;;  %vm5510_vm8 = vcmask 687104  }
 0x276   :  { %v3468_v26 = vsel %vm5507_vm7, %v3467_v52, %v2963_v21  ;;  %3226 = vrot.lane.b32.xlu0 %v2202_v54, %s3716_s2  ;;  %vm5511_vm7 = vcmask 719872   ;;  %v2271_v54 = vcombine.high %v2261_v4, %v3694_v29  ;;  %v2004_v21 = vrot.slane %v1990_v34, %v3762_v33 }
 0x277   :  { %3106 = vrot.lane.b32.xlu1 %v1942_v46, %s3717_s3 }
 0x278   :  { %v2967_v57 = vpop.permute.xlu0 %2966 }
 0x279   :  { %v3469_v43 = vsel %vm5508_vm6, %v3468_v26, %v2967_v57  ;;  %v2971_v50 = vpop.permute.xlu1 %2970  ;;  %vm5512_vm6 = vcmask 752640   ;;  %v2268_v57 = vrot.slane %v2254_v9, %v3762_v33 }
 0x27a   :  { %v3470_v36 = vsel %vm5509_vm9, %v3469_v43, %v2971_v50  ;;  %3230 = vrot.lane.b32.xlu0 %v2206_v49, %s3717_s3  ;;  %vm5513_vm9 = vcmask 785408   ;;  %v2008_v50 = vcombine.high %v2004_v21, %v3694_v29 }
 0x27b   :  { %3110 = vrot.lane.b32.xlu1 %v1981_v31, %s5372_s30  ;;  %v2272_v62 = vcombine.high %v2268_v57, %v3694_v29 }
 0x27c   :  { %v2975_v58 = vpop.permute.xlu0 %2974 }
 0x27d   :  { %v3471_v20 = vsel %vm5510_vm8, %v3470_v36, %v2975_v58  ;;  %v2979_v37 = vpop.permute.xlu1 %2978  ;;  %vm5514_vm8 = vcmask 818176  }
 0x27e   :  { %v3472_v0 = vsel %vm5511_vm7, %v3471_v20, %v2979_v37  ;;  %3234 = vrot.lane.b32.xlu0 %v2245_v25, %s5372_s30  ;;  %vm5516_vm7 = vcmask 228352  }
 0x27f   :  { %3114 = vrot.lane.b32.xlu1 %v2005_v14, %s3719_s5 }
 0x280   :  { %v2983_v63 = vpop.permute.xlu0 %2982 }
 0x281   :  { %v3473_v42 = vsel %vm5512_vm6, %v3472_v0, %v2983_v63  ;;  %v2987_v10 = vpop.permute.xlu1 %2986  ;;  %vm5517_vm6 = vcmask 261120  }
 0x282   :  { %v3474_v23 = vsel %vm5513_vm9, %v3473_v42, %v2987_v10  ;;  %3238 = vrot.lane.b32.xlu0 %v2269_v53, %s3719_s5  ;;  %vm5518_vm9 = vcmask 293888  }
 0x283   :  { %3118 = vrot.lane.b32.xlu1 %v1988_v12, %s3720_s6 }
 0x284   :  { %v2991_v27 = vpop.permute.xlu0 %2990 }
 0x285   :  { %v3475_v39 = vsel %vm5514_vm8, %v3474_v23, %v2991_v27  ;;  %v2995_v59 = vpop.permute.xlu1 %2994  ;;  %vm5519_vm8 = vcmask 326656  }
 0x286   :  { %v3476_v13 = vsel %vm3315_vm13, %v3475_v39, %v2995_v59  ;;  %3242 = vrot.lane.b32.xlu0 %v2252_v55, %s3720_s6 }
 0x287   :  { %3122 = vrot.lane.b32.xlu1 %v2006_v24, %s3721_s7 }
 0x288   :  { %v2999_v38 = vpop.permute.xlu0 %2998 }
 0x289   :  { %v3477_v47 = vsel %vm3317_vm14, %v3476_v13, %v2999_v38  ;;  %v3003_v2 = vpop.permute.xlu1 %3002 }
 0x28a   :  { %v3478_v5 = vsel %vm3319_vm12, %v3477_v47, %v3003_v2  ;;  %3246 = vrot.lane.b32.xlu0 %v2270_v40, %s3721_s7 }
 0x28b   :  { %3126 = vrot.lane.b32.xlu1 %v1997_v17, %s5353_s4 }
 0x28c   :  { %v3007_v8 = vpop.permute.xlu0 %3006 }
 0x28d   :  { %v3479_v7 = vsel %vm5333_vm10, %v3478_v5, %v3007_v8  ;;  %v3011_v44 = vpop.permute.xlu1 %3010  ;;  %vm5522_vm10 = vcmask 424960  }
 0x28e   :  { %v3480_v45 = vsel %vm5332_vm15, %v3479_v7, %v3011_v44  ;;  %3250 = vrot.lane.b32.xlu0 %v2261_v4, %s5353_s4  ;;  %vm5521_vm15 = vcmask 392192  }
 0x28f   :  { %3130 = vrot.lane.b32.xlu1 %v2007_v60, %s3723_s9 }
 0x290   :  { %v3015_v6 = vpop.permute.xlu0 %3014 }
 0x291   :  { %v5190_v61 = vsel %vm5331_vm11, %v3480_v45, %v3015_v6  ;;  %v3019_v52 = vpop.permute.xlu1 %3018  ;;  %vm5520_vm11 = vcmask 359424  }
 0x292   :  { %v3569_v46 = vcombine.low %v5056_v11, %v5190_v61  ;;  %3254 = vrot.lane.b32.xlu0 %v2271_v54, %s3723_s9  ;;  %v3482_v26 = vsel %vm3265_vm0, %v4926_v51, %v3019_v52 }
 0x293   :  { %3134 = vrot.lane.b32.xlu1 %v2004_v21, %s3724_s10 }
 0x294   :  { %v3023_v18 = vpop.permute.xlu0 %3022 }
 0x295   :  { %v3483_v49 = vsel %vm3267_vm1, %v3482_v26, %v3023_v18  ;;  %v3027_v43 = vpop.permute.xlu1 %3026 }
 0x296   :  { %v3484_v31 = vsel %vm3269_vm2, %v3483_v49, %v3027_v43  ;;  %3258 = vrot.lane.b32.xlu0 %v2268_v57, %s3724_s10 }
 0x297   :  { %3138 = vrot.lane.b32.xlu1 %v2008_v50, %s5515_s0 }
 0x298   :  { %v3031_v36 = vpop.permute.xlu0 %3030 }
 0x299   :  { %v3485_v58 = vsel %vm3271_vm3, %v3484_v31, %v3031_v36  ;;  %v3035_v51 = vpop.permute.xlu1 %3034 }
 0x29a   :  { %v3486_v25 = vsel %vm3273_vm4, %v3485_v58, %v3035_v51  ;;  %3262 = vrot.lane.b32.xlu0 %v2272_v62, %s5515_s0 }
 0x29c   :  { %v3039_v33 = vpop.permute.xlu0 %3038 }
 0x29d   :  { %v3487_v56 = vsel %vm3275_vm5, %v3486_v25, %v3039_v33  ;;  %v3043_v3 = vpop.permute.xlu1 %3042 }
 0x29e   :  { %v3488_v20 = vsel %vm5516_vm7, %v3487_v56, %v3043_v3  ;;  %vm5523_vm7 = vcmask 457728  }
 0x2a0   :  { %v3047_v37 = vpop.permute.xlu0 %3046 }
 0x2a1   :  { %v3489_v14 = vsel %vm5517_vm6, %v3488_v20, %v3047_v37  ;;  %v3051_v0 = vpop.permute.xlu1 %3050 }
 0x2a2   :  { %v3490_v48 = vsel %vm5518_vm9, %v3489_v14, %v3051_v0 }
 0x2a4   :  { %v3055_v29 = vpop.permute.xlu0 %3054 }
 0x2a5   :  { %v3491_v22 = vsel %vm5519_vm8, %v3490_v48, %v3055_v29  ;;  %v3059_v35 = vpop.permute.xlu1 %3058 }
 0x2a6   :  { %v3492_v63 = vsel %vm5520_vm11, %v3491_v22, %v3059_v35  ;;  %vm5525_vm11 = vmmov %vm5517_vm6 }
 0x2a8   :  { %v3063_v53 = vpop.permute.xlu0 %3062 }
 0x2a9   :  { %v3493_v41 = vsel %vm5521_vm15, %v3492_v63, %v3063_v53  ;;  %v3067_v28 = vpop.permute.xlu1 %3066 }
 0x2aa   :  { %v3494_v42 = vsel %vm5522_vm10, %v3493_v41, %v3067_v28  ;;  %vm5524_vm10 = vcmask 228352  }
 0x2ac   :  { %v3071_v10 = vpop.permute.xlu0 %3070 }
 0x2ad   :  { %v3495_v12 = vsel %vm5523_vm7, %v3494_v42, %v3071_v10  ;;  %v3143_v23 = vpop.permute.xlu1 %3142 }
 0x2ae   :  { %v3513_v52 = vsel %vm3265_vm0, %v4991_v16, %v3143_v23  ;;  %vm5526_vm0 = vmmov %vm5518_vm9  ;;  %vm5534_vm9 = vcmask 523264  }
 0x2b0   :  { %v3147_v1 = vpop.permute.xlu0 %3146 }
 0x2b1   :  { %v3151_v32 = vpop.permute.xlu1 %3150  ;;  %v3514_v21 = vsel %vm3267_vm1, %v3513_v52, %v3147_v1  ;;  %vm5527_vm1 = vmmov %vm5519_vm8 }
 0x2b2   :  { %v3515_v57 = vsel %vm3269_vm2, %v3514_v21, %v3151_v32  ;;  %vm5528_vm2 = vcmask 359424   ;;  %vm5535_vm8 = vmmov %vm5534_vm9 }
 0x2b4   :  { %v3155_v27 = vpop.permute.xlu0 %3154 }
 0x2b5   :  { %v3159_v55 = vpop.permute.xlu1 %3158  ;;  %v3516_v49 = vsel %vm3271_vm3, %v3515_v57, %v3155_v27  ;;  %vm5529_vm3 = vmmov %vm5521_vm15  ;;  %vm5532_vm15 = vcmask 490496  }
 0x2b6   :  { %v3517_v31 = vsel %vm3273_vm4, %v3516_v49, %v3159_v55  ;;  %vm5530_vm4 = vcmask 424960   ;;  %vm5533_vm6 = vmmov %vm5532_vm15 }
 0x2b8   :  { %v3163_v30 = vpop.permute.xlu0 %3162 }
 0x2b9   :  { %v3167_v39 = vpop.permute.xlu1 %3166  ;;  %v3518_v36 = vsel %vm3275_vm5, %v3517_v31, %v3163_v30  ;;  %vm5531_vm5 = vmmov %vm5523_vm7  ;;  %vm5536_vm7 = vcmask 556032  }
 0x2ba   :  { %v3519_v51 = vsel %vm5524_vm10, %v3518_v36, %v3167_v39  ;;  %vm5537_vm10 = vmmov %vm5536_vm7 }
 0x2bc   :  { %v3171_v59 = vpop.permute.xlu0 %3170 }
 0x2bd   :  { %v3175_v24 = vpop.permute.xlu1 %3174  ;;  %v3520_v16 = vsel %vm5525_vm11, %v3519_v51, %v3171_v59  ;;  %vm5538_vm11 = vcmask 588800  }
 0x2be   :  { %v3521_v56 = vsel %vm5526_vm0, %v3520_v16, %v3175_v24  ;;  %vm5539_vm0 = vmmov %vm5538_vm11 }
 0x2c0   :  { %v3179_v13 = vpop.permute.xlu0 %3178 }
 0x2c1   :  { %v3183_v15 = vpop.permute.xlu1 %3182  ;;  %v3522_v3 = vsel %vm5527_vm1, %v3521_v56, %v3179_v13  ;;  %vm5540_vm1 = vcmask 621568  }
 0x2c2   :  { %v3523_v14 = vsel %vm5528_vm2, %v3522_v3, %v3183_v15  ;;  %vm5541_vm2 = vmmov %vm5540_vm1 }
 0x2c4   :  { %v3187_v38 = vpop.permute.xlu0 %3186 }
 0x2c5   :  { %v3191_v40 = vpop.permute.xlu1 %3190  ;;  %v3524_v0 = vsel %vm5529_vm3, %v3523_v14, %v3187_v38  ;;  %vm5542_vm3 = vcmask 654336  }
 0x2c6   :  { %v3525_v22 = vsel %vm5530_vm4, %v3524_v0, %v3191_v40  ;;  %vm5543_vm4 = vmmov %vm5542_vm3 }
 0x2c8   :  { %v3195_v47 = vpop.permute.xlu0 %3194 }
 0x2c9   :  { %v3075_v2 = vpop.permute.xlu1 %3074  ;;  %v3526_v35 = vsel %vm5531_vm5, %v3525_v22, %v3195_v47  ;;  %vm5544_vm5 = vcmask 687104  }
 0x2ca   :  { %v3496_v53 = vsel %vm5532_vm15, %v3495_v12, %v3075_v2  ;;  %vm5545_vm15 = vmmov %vm5544_vm5 }
 0x2cc   :  { %v3199_v17 = vpop.permute.xlu0 %3198 }
 0x2cd   :  { %v3079_v5 = vpop.permute.xlu1 %3078  ;;  %v3527_v41 = vsel %vm5533_vm6, %v3526_v35, %v3199_v17  ;;  %vm5546_vm6 = vcmask 719872  }
 0x2ce   :  { %v3497_v42 = vsel %vm5534_vm9, %v3496_v53, %v3079_v5  ;;  %vm5547_vm9 = vmmov %vm5546_vm6 }
 0x2d0   :  { %v3203_v8 = vpop.permute.xlu0 %3202 }
 0x2d1   :  { %v3083_v4 = vpop.permute.xlu1 %3082  ;;  %v3528_v10 = vsel %vm5535_vm8, %v3527_v41, %v3203_v8  ;;  %vm5548_vm8 = vcmask 752640  }
 0x2d2   :  { %v3498_v23 = vsel %vm5536_vm7, %v3497_v42, %v3083_v4  ;;  %vm5549_vm7 = vmmov %vm5548_vm8 }
 0x2d4   :  { %v3207_v34 = vpop.permute.xlu0 %3206 }
 0x2d5   :  { %v3087_v7 = vpop.permute.xlu1 %3086  ;;  %v3529_v1 = vsel %vm5537_vm10, %v3528_v10, %v3207_v34  ;;  %vm5550_vm10 = vcmask 785408  }
 0x2d6   :  { %v3499_v32 = vsel %vm5538_vm11, %v3498_v23, %v3087_v7  ;;  %vm5551_vm11 = vmmov %vm5550_vm10 }
 0x2d8   :  { %v3211_v44 = vpop.permute.xlu0 %3210 }
 0x2d9   :  { %v3091_v60 = vpop.permute.xlu1 %3090  ;;  %v3530_v27 = vsel %vm5539_vm0, %v3529_v1, %v3211_v44  ;;  %vm5552_vm0 = vcmask 818176  }
 0x2da   :  { %v3500_v30 = vsel %vm5540_vm1, %v3499_v32, %v3091_v60  ;;  %vm5553_vm1 = vmmov %vm5552_vm0 }
 0x2dc   :  { %v3215_v45 = vpop.permute.xlu0 %3214 }
 0x2dd   :  { %v3095_v9 = vpop.permute.xlu1 %3094  ;;  %v3531_v12 = vsel %vm5541_vm2, %v3530_v27, %v3215_v45  ;;  %vm5554_vm2 = vcmask 949248  }
 0x2de   :  { %v3501_v59 = vsel %vm5542_vm3, %v3500_v30, %v3095_v9  ;;  %vm5555_vm3 = vmmov %vm5554_vm2 }
 0x2e0   :  { %v3219_v6 = vpop.permute.xlu0 %3218 }
 0x2e1   :  { %v3099_v54 = vpop.permute.xlu1 %3098  ;;  %v3532_v24 = vsel %vm5543_vm4, %v3531_v12, %v3219_v6  ;;  %vm5556_vm4 = vcmask 982016  }
 0x2e2   :  { %v3502_v13 = vsel %vm5544_vm5, %v3501_v59, %v3099_v54  ;;  %vm5557_vm5 = vmmov %vm5556_vm4 }
 0x2e4   :  { %v3223_v26 = vpop.permute.xlu0 %3222 }
 0x2e5   :  { %v3103_v18 = vpop.permute.xlu1 %3102  ;;  %v3533_v15 = vsel %vm5545_vm15, %v3532_v24, %v3223_v26 }
 0x2e6   :  { %v3503_v38 = vsel %vm5546_vm6, %v3502_v13, %v3103_v18 }
 0x2e8   :  { %v3227_v43 = vpop.permute.xlu0 %3226 }
 0x2e9   :  { %v3107_v50 = vpop.permute.xlu1 %3106  ;;  %v3534_v40 = vsel %vm5547_vm9, %v3533_v15, %v3227_v43 }
 0x2ea   :  { %v3504_v2 = vsel %vm5548_vm8, %v3503_v38, %v3107_v50 }
 0x2ec   :  { %v3231_v62 = vpop.permute.xlu0 %3230 }
 0x2ed   :  { %v3111_v58 = vpop.permute.xlu1 %3110  ;;  %v3535_v17 = vsel %vm5549_vm7, %v3534_v40, %v3231_v62  ;;  %v3577_v62 = vrot.slane %v3569_v46, %v3748_v19 }
 0x2ee   :  { %v3505_v8 = vsel %vm5550_vm10, %v3504_v2, %v3111_v58 }
 0x2f0   :  { %v3235_v25 = vpop.permute.xlu0 %3234 }
 0x2f1   :  { %v3115_v33 = vpop.permute.xlu1 %3114  ;;  %v3536_v4 = vsel %vm5551_vm11, %v3535_v17, %v3235_v25 }
 0x2f2   :  { %v3506_v34 = vsel %vm5552_vm0, %v3505_v8, %v3115_v33 }
 0x2f4   :  { %v3239_v20 = vpop.permute.xlu0 %3238 }
 0x2f5   :  { %v3119_v37 = vpop.permute.xlu1 %3118  ;;  %v3537_v7 = vsel %vm5553_vm1, %v3536_v4, %v3239_v20 }
 0x2f6   :  { %v3507_v44 = vsel %vm3315_vm13, %v3506_v34, %v3119_v37 }
 0x2f8   :  { %v3243_v48 = vpop.permute.xlu0 %3242 }
 0x2f9   :  { %v3123_v29 = vpop.permute.xlu1 %3122  ;;  %v3538_v60 = vsel %vm3315_vm13, %v3537_v7, %v3243_v48  ;;  %vm5558_vm13 = vcmask 1014784  }
 0x2fa   :  { %v3508_v9 = vsel %vm3317_vm14, %v3507_v44, %v3123_v29  ;;  %vm5559_vm15 = vmmov %vm5558_vm13 }
 0x2fc   :  { %v3247_v63 = vpop.permute.xlu0 %3246 }
 0x2fd   :  { %v3127_v28 = vpop.permute.xlu1 %3126  ;;  %v3539_v6 = vsel %vm3317_vm14, %v3538_v60, %v3247_v63 }
 0x2fe   :  { %v3509_v54 = vsel %vm3319_vm12, %v3508_v9, %v3127_v28 }
 0x300   :  { %v3251_v55 = vpop.permute.xlu0 %3250 }
 0x301   :  { %v3131_v39 = vpop.permute.xlu1 %3130  ;;  %v3540_v52 = vsel %vm3319_vm12, %v3539_v6, %v3251_v55 }
 0x302   :  { %v3510_v26 = vsel %vm5554_vm2, %v3509_v54, %v3131_v39 }
 0x304   :  { %v3255_v47 = vpop.permute.xlu0 %3254 }
 0x305   :  { %v3135_v5 = vpop.permute.xlu1 %3134  ;;  %v3541_v18 = vsel %vm5555_vm3, %v3540_v52, %v3255_v47 }
 0x306   :  { %v3511_v57 = vsel %vm5556_vm4, %v3510_v26, %v3135_v5 }
 0x308   :  { %v3259_v45 = vpop.permute.xlu0 %3258 }
 0x309   :  { %v3139_v21 = vpop.permute.xlu1 %3138  ;;  %v3542_v49 = vsel %vm5557_vm5, %v3541_v18, %v3259_v45 }
 0x30a   :  { %v3512_v50 = vsel %vm5558_vm13, %v3511_v57, %v3139_v21 }
 0x30c   :  { %v3263_v43 = vpop.permute.xlu0 %3262 }
 0x30d   :  { %v3543_v31 = vsel %vm5559_vm15, %v3542_v49, %v3263_v43 }
 0x30e   :  { %v3570_v36 = vcombine.low %v3512_v50, %v3543_v31 }
 0x310   :  { %v3584_v58 = vrot.slane %v3570_v36, %v3748_v19 }
 0x312   :  { %v3585_v51 = vcombine.low %v3577_v62, %v3584_v58 }
 0x314   :  { %3589 = vst [vmem:[#allocation5 + $0x8] sm:$0xff] %v3585_v51 }
 0x315   :  { %3678 = shalt.err (!%p3675_p9)
}
 0x316   :  { %3599 = dma.vmem_to_hbm [thread:$0]  %s3597_s12, 256, %s5276_s1, [#allocation4]  }
 0x317   :  { %3689 = dma.done.wait [#allocation4], 256  }
 0x318   :  { %3690 = vsyncadd [#allocation4], 4294967040 }
 0x319   :  { %3603 = vsyncpa [#allocation3], 1 }
 0x31a   :  { %3604 = vsyncpa [#allocation4], 1 }

</bundles_post_ra>
